<compile_context>
chip_gen: v7x
topology: tpu7x:2x2x1
jax: 0.10.0
libtpu: 0.0.40
codegen_flags: <defaults>
</compile_context>

<pallas_src>
import functools

import jax
import jax.numpy as jnp
from jax.experimental import pallas as pl
from jax.experimental.pallas import tpu as pltpu


def _fused_decoder_kernel(*refs, width, couts, acts):
    """All decoder layers for one sample, fully resident in VMEM.

    refs = (x_ref, w_ref_0, ..., w_ref_{L-1}, o_ref)
      x_ref   : (1, Cin0, HW)            input sample, channels x flat spatial
      w_ref_l : (4*Cout_l, 4*Cin_l)      block-packed sub-pixel tap matrix
      o_ref   : (1, R*R, Cout_last, HW)  output parity planes, R = 2**L,
                                         plane index = oh*R + ow
    """
    num_layers = len(couts)
    x_ref = refs[0]
    w_refs = refs[1:1 + num_layers]
    o_ref = refs[1 + num_layers]

    hw = x_ref.shape[-1]
    w_sp = width

    # Lane-index masks for coarse-grid neighbour shifts (shared by all layers).
    lane = jax.lax.broadcasted_iota(jnp.int32, (1, hw), 1)
    m_right = (lane % w_sp) != (w_sp - 1)          # column j+1 exists
    m_down = lane < (hw - w_sp)                    # row i+1 exists
    m_diag = jnp.logical_and(m_right, m_down)

    # shifted[:, i*W+j] = a[:, i*W + (j+1)] / a[:, (i+1)*W + j] / a[:, (i+1)*W + (j+1)]
    # pltpu.roll follows jnp.roll semantics; rolling by (hw - s) == rolling by -s.
    # The rolls hit the XLU slot and overlap with the MXU dots.
    def shift_w(a):
        return jnp.where(m_right, pltpu.roll(a, hw - 1, axis=1), 0.0)

    def shift_h(a):
        return jnp.where(m_down, pltpu.roll(a, hw - w_sp, axis=1), 0.0)

    def shift_hw(a):
        return jnp.where(m_diag, pltpu.roll(a, hw - w_sp - 1, axis=1), 0.0)

    # planes[(oh, ow)][c, i*W0+j] == activation[c, P*i + oh, P*j + ow],  P = 2**layer
    planes = {(0, 0): x_ref[0].astype(jnp.float32)}

    for li in range(num_layers):
        cout = couts[li]
        act = acts[li]
        w_big = w_refs[li][...]                    # (4*Cout, 4*Cin)
        pp = 1 << li                               # per-axis plane count of the input

        def right_of(oh, ow):
            if ow + 1 < pp:
                return planes[(oh, ow + 1)]
            return shift_w(planes[(oh, 0)])

        def down_of(oh, ow):
            if oh + 1 < pp:
                return planes[(oh + 1, ow)]
            return shift_h(planes[(0, ow)])

        def diag_of(oh, ow):
            if oh + 1 < pp and ow + 1 < pp:
                return planes[(oh + 1, ow + 1)]
            if oh + 1 < pp:
                return shift_w(planes[(oh + 1, 0)])
            if ow + 1 < pp:
                return shift_h(planes[(0, ow + 1)])
            return shift_hw(planes[(0, 0)])

        # One block matmul per input plane -> all four output parity planes:
        # rows [p*Cout:(p+1)*Cout] of y are parity p in [ee, eo, oe, oo] order.
        raw = {}
        ssum4 = jnp.zeros((4 * cout, 1), jnp.float32)
        ssq4 = jnp.zeros((4 * cout, 1), jnp.float32)
        for oh in range(pp):
            for ow in range(pp):
                x_stack = jnp.concatenate(
                    [planes[(oh, ow)], right_of(oh, ow),
                     down_of(oh, ow), diag_of(oh, ow)], axis=0)       # (4*Cin, HW)
                y = jnp.dot(w_big, x_stack,
                            preferred_element_type=jnp.float32)      # (4*Cout, HW)
                ssum4 = ssum4 + jnp.sum(y, axis=1, keepdims=True)
                ssq4 = ssq4 + jnp.sum(y * y, axis=1, keepdims=True)
                raw[(oh, ow)] = y

        # InstanceNorm2d (affine=False, eps=1e-5): per-channel stats over the full
        # (2^l*H0) x (2^l*W0) sample = all input planes x 4 output parities.
        # Single-pass sum / sum-of-squares; no centered intermediates materialized.
        npix = float(pp * pp * 4 * hw)
        ssum = (ssum4[0:cout] + ssum4[cout:2 * cout]
                + ssum4[2 * cout:3 * cout] + ssum4[3 * cout:4 * cout])
        ssq = (ssq4[0:cout] + ssq4[cout:2 * cout]
               + ssq4[2 * cout:3 * cout] + ssq4[3 * cout:4 * cout])
        mean = ssum / npix
        var = ssq / npix - mean * mean             # biased variance, like PyTorch IN
        inv = jax.lax.rsqrt(var + 1e-5)            # (Cout, 1)
        scale4 = jnp.concatenate([inv] * 4, axis=0)              # (4*Cout, 1)
        offset4 = jnp.concatenate([-mean * inv] * 4, axis=0)

        new_planes = {}
        for oh in range(pp):
            for ow in range(pp):
                z = raw[(oh, ow)] * scale4 + offset4
                z = jnp.maximum(z, 0.0) if act == "relu" else jax.nn.sigmoid(z)
                for ph in range(2):
                    for pw in range(2):
                        p = 2 * ph + pw
                        new_planes[(2 * oh + ph, 2 * ow + pw)] = \
                            z[p * cout:(p + 1) * cout]
        planes = new_planes

    # Write the final parity planes; plane (oh, ow) -> o_ref[0, oh*R + ow].
    r = 1 << num_layers
    for oh in range(r):
        for ow in range(r):
            o_ref[0, oh * r + ow] = planes[(oh, ow)]


def _block_weight(w_pt):
    """Pack a PyTorch ConvTranspose2d weight (Cin, Cout, 3, 3) into the sub-pixel
    block matrix (4*Cout, 4*Cin) used by the kernel.

    Block rows = output parity [ee, eo, oe, oo]; block cols = input neighbour
    [self, right, down, diag]; each block is the (Cout, Cin) tap matrix W[kh,kw]^T
    (or zeros where that tap does not contribute).
    """
    cin, cout = int(w_pt.shape[0]), int(w_pt.shape[1])
    t = lambda kh, kw: jnp.transpose(w_pt[:, :, kh, kw])    # (Cout, Cin)
    z = jnp.zeros((cout, cin), w_pt.dtype)
    rows = [
        jnp.concatenate([t(1, 1), z,       z,       z      ], axis=1),   # ee
        jnp.concatenate([t(1, 2), t(1, 0), z,       z      ], axis=1),   # eo
        jnp.concatenate([t(2, 1), z,       t(0, 1), z      ], axis=1),   # oe
        jnp.concatenate([t(2, 2), t(2, 0), t(0, 2), t(0, 0)], axis=1),   # oo
    ]
    return jnp.concatenate(rows, axis=0)                     # (4*Cout, 4*Cin)


def conv_transpose_decoder(x, params):
    """x: (N, C, H, W) NCHW; params: list of (weight, bias) in PyTorch layout.

    One fused pallas_call for the entire decoder (grid = batch dimension).
    The ConvTranspose2d biases are mathematically cancelled by the affine-free
    InstanceNorm that follows each conv, so they are not passed to the kernel.
    """
    N, cin0, H0, W0 = x.shape
    HW = H0 * W0
    L = len(params)
    R = 2 ** L
    couts = tuple(int(w.shape[1]) for (w, _) in params)
    acts = tuple("sigmoid" if i == L - 1 else "relu" for i in range(L))
    cout_last = couts[-1]

    x_flat = x.reshape(N, cin0, HW).astype(jnp.float32)      # lane-dense input
    w_blocks = [_block_weight(w.astype(jnp.float32)) for (w, _) in params]

    # Advisory cost: useful 9-tap flops per layer; transcendentals only for the
    # final sigmoid (per-channel rsqrts are negligible); no bias traffic.
    cins = (cin0,) + couts[:-1]
    flops = sum(2 * 9 * cins[i] * couts[i] * (4 ** i) * HW for i in range(L)) * N
    cost = pl.CostEstimate(
        flops=flops,
        transcendentals=N * (4 ** L) * HW * cout_last,
        bytes_accessed=4 * (N * cin0 * HW + N * (4 ** L) * cout_last * HW
                            + sum(wb.size for wb in w_blocks)))

    kernel = functools.partial(_fused_decoder_kernel,
                               width=W0, couts=couts, acts=acts)

    out = pl.pallas_call(
        kernel,
        out_shape=jax.ShapeDtypeStruct((N, R * R, cout_last, HW), jnp.float32),
        grid_spec=pl.GridSpec(
            grid=(N,),
            in_specs=[pl.BlockSpec((1, cin0, HW), lambda n: (n, 0, 0))]
                     + [pl.BlockSpec(wb.shape, lambda n: (0, 0)) for wb in w_blocks],
            out_specs=pl.BlockSpec((1, R * R, cout_last, HW),
                                   lambda n: (n, 0, 0, 0)),
        ),
        compiler_params=pltpu.CompilerParams(
            dimension_semantics=("parallel",)),
        cost_estimate=cost,
    )(x_flat, *w_blocks)

    # Single parity-plane -> NCHW interleave, once, on the final output only.
    y = out.reshape(N, R, R, cout_last, H0, W0)
    y = jnp.transpose(y, (0, 3, 4, 1, 5, 2))                 # (N, C, H0, R, W0, R)
    return y.reshape(N, cout_last, H0 * R, W0 * R)


def init_params(key, input_channels, output_channels, num_upsampling_layers):
    """Deterministic synthetic params in PyTorch ConvTranspose2d layout:
    weight (Cin, Cout, 3, 3), bias (Cout,)."""
    in_ch = [int(input_channels / 2 ** i) for i in range(num_upsampling_layers)]
    out_ch = [int(input_channels / 2 ** (i + 1))
              for i in range(num_upsampling_layers - 1)] + [output_channels]
    keys = jax.random.split(key, 2 * num_upsampling_layers)
    params = []
    for li, (cin, cout) in enumerate(zip(in_ch, out_ch)):
        bound = (cin * 9) ** -0.5
        w = jax.random.uniform(keys[2 * li], (cin, cout, 3, 3),
                               minval=-bound, maxval=bound, dtype=jnp.float32)
        b = jax.random.uniform(keys[2 * li + 1], (cout,),
                               minval=-bound, maxval=bound, dtype=jnp.float32)
        params.append((w, b))
    return params


def reference_forward(x, params):
    """Pure-JAX reference replicating the PyTorch module exactly (incl. bias)."""
    h = x
    n_layers = len(params)
    for li, (w_pt, b_pt) in enumerate(params):
        cout = w_pt.shape[1]
        # ConvTranspose2d(k=3,s=2,p=1,output_padding=1) == regular conv of the
        # 2x zero-dilated input with padding (1,2) and the spatially-flipped kernel.
        w_oihw = jnp.transpose(w_pt[:, :, ::-1, ::-1], (1, 0, 2, 3))
        y = jax.lax.conv_general_dilated(
            h, w_oihw, window_strides=(1, 1), padding=((1, 2), (1, 2)),
            lhs_dilation=(2, 2), dimension_numbers=("NCHW", "OIHW", "NCHW"))
        y = y + b_pt.reshape(1, cout, 1, 1)
        mean = jnp.mean(y, axis=(2, 3), keepdims=True)
        var = jnp.var(y, axis=(2, 3), keepdims=True)        # biased, like PyTorch IN
        y = (y - mean) * jax.lax.rsqrt(var + 1e-5)
        h = jnp.maximum(y, 0.0) if li < n_layers - 1 else jax.nn.sigmoid(y)
    return h


if __name__ == "__main__":
    # ConvTransposeDecoder(input_channels=16, output_channels=4, num_upsampling_layers=2)
    input_channels, output_channels, num_upsampling_layers = 16, 4, 2
    N, H, W = 2, 16, 16

    key = jax.random.PRNGKey(0)
    kx, kp = jax.random.split(key)
    x = jax.random.normal(kx, (N, input_channels, H, W), dtype=jnp.float32)
    params = init_params(kp, input_channels, output_channels, num_upsampling_layers)

    decoder = jax.jit(conv_transpose_decoder)
    out = jax.block_until_ready(decoder(x, params))

    ref = reference_forward(x, params)
    scale = 2 ** num_upsampling_layers
    assert out.shape == (N, output_channels, H * scale, W * scale), out.shape
    max_err = float(jnp.max(jnp.abs(out - ref)))
    assert jnp.allclose(out, ref, atol=1e-4, rtol=1e-4), f"max abs err {max_err}"

    print("KERNEL_OK")
</pallas_src>

<mosaic_0001>
module attributes {stable_mosaic.version = 11 : i64} {
  func.func @_fused_decoder_kernel(%arg0: i32, %arg1: memref<1x16x256xf32, #tpu.memory_space<vmem>>, %arg2: memref<32x64xf32, #tpu.memory_space<vmem>>, %arg3: memref<16x32xf32, #tpu.memory_space<vmem>>, %arg4: memref<1x16x4x256xf32, #tpu.memory_space<vmem>>) attributes {dimension_semantics = [#tpu.dimension_semantics<parallel>], iteration_bounds = array<i64: 2>, scalar_prefetch = 0 : i64, scratch_operands = 0 : i64, tpu.core_type = #tpu.core_type<tc>, window_params = [{transform_indices = @transform_0, window_bounds = array<i64: 1, 16, 256>}, {pipeline_mode = #tpu.pipeline_mode<synchronous>, transform_indices = @transform_1, window_bounds = array<i64: 32, 64>}, {pipeline_mode = #tpu.pipeline_mode<synchronous>, transform_indices = @transform_2, window_bounds = array<i64: 16, 32>}, {transform_indices = @transform_3, window_bounds = array<i64: 1, 16, 4, 256>}]} {
    %0 = tpu.iota {dimensions = array<i32: 1>} : vector<1x256xi32>
    %c16_i32 = arith.constant 16 : i32
    %c0_i32 = arith.constant 0 : i32
    %1 = arith.cmpi eq, %c16_i32, %c0_i32 : i32
    %c1_i32 = arith.constant 1 : i32
    %2 = arith.select %1, %c1_i32, %c16_i32 : i32
    %3 = vector.broadcast %2 : i32 to vector<1x256xi32>
    %4 = arith.remsi %0, %3 : vector<1x256xi32>
    %c0_i32_0 = arith.constant 0 : i32
    %5 = vector.broadcast %c0_i32_0 : i32 to vector<1x256xi32>
    %6 = arith.cmpi ne, %4, %5 : vector<1x256xi32>
    %c0_i32_1 = arith.constant 0 : i32
    %7 = vector.broadcast %c0_i32_1 : i32 to vector<1x256xi32>
    %8 = arith.cmpi slt, %4, %7 : vector<1x256xi32>
    %c0_i32_2 = arith.constant 0 : i32
    %9 = arith.cmpi slt, %2, %c0_i32_2 : i32
    %10 = vector.broadcast %9 : i1 to vector<1x256xi1>
    %11 = vector.broadcast %10 : vector<1x256xi1> to vector<1x256xi1>
    %12 = arith.xori %8, %11 : vector<1x256xi1>
    %13 = arith.andi %12, %6 : vector<1x256xi1>
    %14 = vector.broadcast %2 : i32 to vector<1x256xi32>
    %15 = arith.addi %4, %14 : vector<1x256xi32>
    %16 = arith.select %13, %15, %4 : vector<1x256xi1>, vector<1x256xi32>
    %c15_i32 = arith.constant 15 : i32
    %17 = vector.broadcast %c15_i32 : i32 to vector<1x256xi32>
    %18 = arith.cmpi ne, %16, %17 : vector<1x256xi32>
    %c240_i32 = arith.constant 240 : i32
    %19 = vector.broadcast %c240_i32 : i32 to vector<1x256xi32>
    %20 = arith.cmpi slt, %0, %19 : vector<1x256xi32>
    %21 = arith.andi %18, %20 : vector<1x256xi1>
    %c0 = arith.constant 0 : index
    %c0_3 = arith.constant 0 : index
    %c0_4 = arith.constant 0 : index
    %22 = vector.load %arg1[%c0, %c0_3, %c0_4] : memref<1x16x256xf32, #tpu.memory_space<vmem>>, vector<1x16x256xf32>
    %23 = vector.shape_cast %22 : vector<1x16x256xf32> to vector<16x256xf32>
    %c0_5 = arith.constant 0 : index
    %c0_6 = arith.constant 0 : index
    %24 = vector.load %arg2[%c0_5, %c0_6] : memref<32x64xf32, #tpu.memory_space<vmem>>, vector<32x64xf32>
    %cst = arith.constant 0.000000e+00 : f32
    %25 = vector.broadcast %cst : f32 to vector<32x1xf32>
    %cst_7 = arith.constant 0.000000e+00 : f32
    %26 = vector.broadcast %cst_7 : f32 to vector<32x1xf32>
    %c255_i32 = arith.constant 255 : i32
    %27 = tpu.dynamic_rotate %23 by %c255_i32 dim 1 : vector<16x256xf32>, i32 -> vector<16x256xf32>
    %cst_8 = arith.constant 0.000000e+00 : f32
    %28 = vector.shape_cast %18 : vector<1x256xi1> to vector<1x256xi1>
    %29 = vector.broadcast %28 : vector<1x256xi1> to vector<16x256xi1>
    %30 = vector.broadcast %cst_8 : f32 to vector<16x256xf32>
    %31 = arith.select %29, %27, %30 : vector<16x256xi1>, vector<16x256xf32>
    %c240_i32_9 = arith.constant 240 : i32
    %32 = tpu.dynamic_rotate %23 by %c240_i32_9 dim 1 : vector<16x256xf32>, i32 -> vector<16x256xf32>
    %cst_10 = arith.constant 0.000000e+00 : f32
    %33 = vector.shape_cast %20 : vector<1x256xi1> to vector<1x256xi1>
    %34 = vector.broadcast %33 : vector<1x256xi1> to vector<16x256xi1>
    %35 = vector.broadcast %cst_10 : f32 to vector<16x256xf32>
    %36 = arith.select %34, %32, %35 : vector<16x256xi1>, vector<16x256xf32>
    %c239_i32 = arith.constant 239 : i32
    %37 = tpu.dynamic_rotate %23 by %c239_i32 dim 1 : vector<16x256xf32>, i32 -> vector<16x256xf32>
    %cst_11 = arith.constant 0.000000e+00 : f32
    %38 = vector.shape_cast %21 : vector<1x256xi1> to vector<1x256xi1>
    %39 = vector.broadcast %38 : vector<1x256xi1> to vector<16x256xi1>
    %40 = vector.broadcast %cst_11 : f32 to vector<16x256xf32>
    %41 = arith.select %39, %37, %40 : vector<16x256xi1>, vector<16x256xf32>
    %42 = tpu.concatenate %23, %31, %36, %41 in 0 : vector<16x256xf32>, vector<16x256xf32>, vector<16x256xf32>, vector<16x256xf32> -> vector<64x256xf32>
    %cst_12 = arith.constant dense<0.000000e+00> : vector<32x256xf32>
    %43 = tpu.matmul %24, %42, %cst_12 {dimension_numbers = #tpu.dot_dimension_numbers<[1], [0], [0], [1], [0, 0, 1, 1], [], []>} : vector<32x64xf32>, vector<64x256xf32>, vector<32x256xf32> -> vector<32x256xf32>
    %cst_13 = arith.constant dense<0.000000e+00> : vector<32xf32>
    %44 = vector.multi_reduction <add>, %43, %cst_13 [1] : vector<32x256xf32> to vector<32xf32>
    %45 = vector.shape_cast %44 : vector<32xf32> to vector<32x1xf32>
    %46 = arith.addf %25, %45 : vector<32x1xf32>
    %47 = arith.mulf %43, %43 : vector<32x256xf32>
    %cst_14 = arith.constant dense<0.000000e+00> : vector<32xf32>
    %48 = vector.multi_reduction <add>, %47, %cst_14 [1] : vector<32x256xf32> to vector<32xf32>
    %49 = vector.shape_cast %48 : vector<32xf32> to vector<32x1xf32>
    %50 = arith.addf %26, %49 : vector<32x1xf32>
    %51 = vector.extract_strided_slice %46 {offsets = [0, 0], sizes = [8, 1], strides = [1, 1]} : vector<32x1xf32> to vector<8x1xf32>
    %52 = vector.extract_strided_slice %46 {offsets = [8, 0], sizes = [8, 1], strides = [1, 1]} : vector<32x1xf32> to vector<8x1xf32>
    %53 = arith.addf %51, %52 : vector<8x1xf32>
    %54 = vector.extract_strided_slice %46 {offsets = [16, 0], sizes = [8, 1], strides = [1, 1]} : vector<32x1xf32> to vector<8x1xf32>
    %55 = arith.addf %53, %54 : vector<8x1xf32>
    %56 = vector.extract_strided_slice %46 {offsets = [24, 0], sizes = [8, 1], strides = [1, 1]} : vector<32x1xf32> to vector<8x1xf32>
    %57 = arith.addf %55, %56 : vector<8x1xf32>
    %58 = vector.extract_strided_slice %50 {offsets = [0, 0], sizes = [8, 1], strides = [1, 1]} : vector<32x1xf32> to vector<8x1xf32>
    %59 = vector.extract_strided_slice %50 {offsets = [8, 0], sizes = [8, 1], strides = [1, 1]} : vector<32x1xf32> to vector<8x1xf32>
    %60 = arith.addf %58, %59 : vector<8x1xf32>
    %61 = vector.extract_strided_slice %50 {offsets = [16, 0], sizes = [8, 1], strides = [1, 1]} : vector<32x1xf32> to vector<8x1xf32>
    %62 = arith.addf %60, %61 : vector<8x1xf32>
    %63 = vector.extract_strided_slice %50 {offsets = [24, 0], sizes = [8, 1], strides = [1, 1]} : vector<32x1xf32> to vector<8x1xf32>
    %64 = arith.addf %62, %63 : vector<8x1xf32>
    %cst_15 = arith.constant 1.024000e+03 : f32
    %65 = vector.broadcast %cst_15 : f32 to vector<8x1xf32>
    %66 = arith.divf %57, %65 : vector<8x1xf32>
    %cst_16 = arith.constant 1.024000e+03 : f32
    %67 = vector.broadcast %cst_16 : f32 to vector<8x1xf32>
    %68 = arith.divf %64, %67 : vector<8x1xf32>
    %69 = arith.mulf %66, %66 : vector<8x1xf32>
    %70 = arith.subf %68, %69 : vector<8x1xf32>
    %cst_17 = arith.constant 9.99999974E-6 : f32
    %71 = vector.broadcast %cst_17 : f32 to vector<8x1xf32>
    %72 = arith.addf %70, %71 : vector<8x1xf32>
    %73 = math.rsqrt %72 : vector<8x1xf32>
    %74 = tpu.concatenate %73, %73, %73, %73 in 0 : vector<8x1xf32>, vector<8x1xf32>, vector<8x1xf32>, vector<8x1xf32> -> vector<32x1xf32>
    %cst_18 = arith.constant 0.000000e+00 : f32
    %75 = vector.broadcast %cst_18 : f32 to vector<8x1xf32>
    %76 = arith.subf %75, %66 : vector<8x1xf32>
    %77 = arith.mulf %76, %73 : vector<8x1xf32>
    %78 = tpu.concatenate %77, %77, %77, %77 in 0 : vector<8x1xf32>, vector<8x1xf32>, vector<8x1xf32>, vector<8x1xf32> -> vector<32x1xf32>
    %79 = vector.broadcast %74 : vector<32x1xf32> to vector<32x256xf32>
    %80 = arith.mulf %43, %79 : vector<32x256xf32>
    %81 = vector.broadcast %78 : vector<32x1xf32> to vector<32x256xf32>
    %82 = arith.addf %80, %81 : vector<32x256xf32>
    %cst_19 = arith.constant 0.000000e+00 : f32
    %83 = vector.broadcast %cst_19 : f32 to vector<32x256xf32>
    %84 = arith.maximumf %82, %83 : vector<32x256xf32>
    %85 = vector.extract_strided_slice %84 {offsets = [0, 0], sizes = [8, 256], strides = [1, 1]} : vector<32x256xf32> to vector<8x256xf32>
    %86 = vector.extract_strided_slice %84 {offsets = [8, 0], sizes = [8, 256], strides = [1, 1]} : vector<32x256xf32> to vector<8x256xf32>
    %87 = vector.extract_strided_slice %84 {offsets = [16, 0], sizes = [8, 256], strides = [1, 1]} : vector<32x256xf32> to vector<8x256xf32>
    %88 = vector.extract_strided_slice %84 {offsets = [24, 0], sizes = [8, 256], strides = [1, 1]} : vector<32x256xf32> to vector<8x256xf32>
    %c0_20 = arith.constant 0 : index
    %c0_21 = arith.constant 0 : index
    %89 = vector.load %arg3[%c0_20, %c0_21] : memref<16x32xf32, #tpu.memory_space<vmem>>, vector<16x32xf32>
    %cst_22 = arith.constant 0.000000e+00 : f32
    %90 = vector.broadcast %cst_22 : f32 to vector<16x1xf32>
    %cst_23 = arith.constant 0.000000e+00 : f32
    %91 = vector.broadcast %cst_23 : f32 to vector<16x1xf32>
    %92 = tpu.concatenate %85, %86, %87, %88 in 0 : vector<8x256xf32>, vector<8x256xf32>, vector<8x256xf32>, vector<8x256xf32> -> vector<32x256xf32>
    %cst_24 = arith.constant dense<0.000000e+00> : vector<16x256xf32>
    %93 = tpu.matmul %89, %92, %cst_24 {dimension_numbers = #tpu.dot_dimension_numbers<[1], [0], [0], [1], [0, 0, 1, 1], [], []>} : vector<16x32xf32>, vector<32x256xf32>, vector<16x256xf32> -> vector<16x256xf32>
    %cst_25 = arith.constant dense<0.000000e+00> : vector<16xf32>
    %94 = vector.multi_reduction <add>, %93, %cst_25 [1] : vector<16x256xf32> to vector<16xf32>
    %95 = vector.shape_cast %94 : vector<16xf32> to vector<16x1xf32>
    %96 = arith.addf %90, %95 : vector<16x1xf32>
    %97 = arith.mulf %93, %93 : vector<16x256xf32>
    %cst_26 = arith.constant dense<0.000000e+00> : vector<16xf32>
    %98 = vector.multi_reduction <add>, %97, %cst_26 [1] : vector<16x256xf32> to vector<16xf32>
    %99 = vector.shape_cast %98 : vector<16xf32> to vector<16x1xf32>
    %100 = arith.addf %91, %99 : vector<16x1xf32>
    %c255_i32_27 = arith.constant 255 : i32
    %101 = tpu.dynamic_rotate %85 by %c255_i32_27 dim 1 : vector<8x256xf32>, i32 -> vector<8x256xf32>
    %cst_28 = arith.constant 0.000000e+00 : f32
    %102 = vector.shape_cast %18 : vector<1x256xi1> to vector<1x256xi1>
    %103 = vector.broadcast %102 : vector<1x256xi1> to vector<8x256xi1>
    %104 = vector.broadcast %cst_28 : f32 to vector<8x256xf32>
    %105 = arith.select %103, %101, %104 : vector<8x256xi1>, vector<8x256xf32>
    %c255_i32_29 = arith.constant 255 : i32
    %106 = tpu.dynamic_rotate %87 by %c255_i32_29 dim 1 : vector<8x256xf32>, i32 -> vector<8x256xf32>
    %cst_30 = arith.constant 0.000000e+00 : f32
    %107 = vector.shape_cast %18 : vector<1x256xi1> to vector<1x256xi1>
    %108 = vector.broadcast %107 : vector<1x256xi1> to vector<8x256xi1>
    %109 = vector.broadcast %cst_30 : f32 to vector<8x256xf32>
    %110 = arith.select %108, %106, %109 : vector<8x256xi1>, vector<8x256xf32>
    %111 = tpu.concatenate %86, %105, %88, %110 in 0 : vector<8x256xf32>, vector<8x256xf32>, vector<8x256xf32>, vector<8x256xf32> -> vector<32x256xf32>
    %cst_31 = arith.constant dense<0.000000e+00> : vector<16x256xf32>
    %112 = tpu.matmul %89, %111, %cst_31 {dimension_numbers = #tpu.dot_dimension_numbers<[1], [0], [0], [1], [0, 0, 1, 1], [], []>} : vector<16x32xf32>, vector<32x256xf32>, vector<16x256xf32> -> vector<16x256xf32>
    %cst_32 = arith.constant dense<0.000000e+00> : vector<16xf32>
    %113 = vector.multi_reduction <add>, %112, %cst_32 [1] : vector<16x256xf32> to vector<16xf32>
    %114 = vector.shape_cast %113 : vector<16xf32> to vector<16x1xf32>
    %115 = arith.addf %96, %114 : vector<16x1xf32>
    %116 = arith.mulf %112, %112 : vector<16x256xf32>
    %cst_33 = arith.constant dense<0.000000e+00> : vector<16xf32>
    %117 = vector.multi_reduction <add>, %116, %cst_33 [1] : vector<16x256xf32> to vector<16xf32>
    %118 = vector.shape_cast %117 : vector<16xf32> to vector<16x1xf32>
    %119 = arith.addf %100, %118 : vector<16x1xf32>
    %c240_i32_34 = arith.constant 240 : i32
    %120 = tpu.dynamic_rotate %85 by %c240_i32_34 dim 1 : vector<8x256xf32>, i32 -> vector<8x256xf32>
    %cst_35 = arith.constant 0.000000e+00 : f32
    %121 = vector.shape_cast %20 : vector<1x256xi1> to vector<1x256xi1>
    %122 = vector.broadcast %121 : vector<1x256xi1> to vector<8x256xi1>
    %123 = vector.broadcast %cst_35 : f32 to vector<8x256xf32>
    %124 = arith.select %122, %120, %123 : vector<8x256xi1>, vector<8x256xf32>
    %c240_i32_36 = arith.constant 240 : i32
    %125 = tpu.dynamic_rotate %86 by %c240_i32_36 dim 1 : vector<8x256xf32>, i32 -> vector<8x256xf32>
    %cst_37 = arith.constant 0.000000e+00 : f32
    %126 = vector.shape_cast %20 : vector<1x256xi1> to vector<1x256xi1>
    %127 = vector.broadcast %126 : vector<1x256xi1> to vector<8x256xi1>
    %128 = vector.broadcast %cst_37 : f32 to vector<8x256xf32>
    %129 = arith.select %127, %125, %128 : vector<8x256xi1>, vector<8x256xf32>
    %130 = tpu.concatenate %87, %88, %124, %129 in 0 : vector<8x256xf32>, vector<8x256xf32>, vector<8x256xf32>, vector<8x256xf32> -> vector<32x256xf32>
    %cst_38 = arith.constant dense<0.000000e+00> : vector<16x256xf32>
    %131 = tpu.matmul %89, %130, %cst_38 {dimension_numbers = #tpu.dot_dimension_numbers<[1], [0], [0], [1], [0, 0, 1, 1], [], []>} : vector<16x32xf32>, vector<32x256xf32>, vector<16x256xf32> -> vector<16x256xf32>
    %cst_39 = arith.constant dense<0.000000e+00> : vector<16xf32>
    %132 = vector.multi_reduction <add>, %131, %cst_39 [1] : vector<16x256xf32> to vector<16xf32>
    %133 = vector.shape_cast %132 : vector<16xf32> to vector<16x1xf32>
    %134 = arith.addf %115, %133 : vector<16x1xf32>
    %135 = arith.mulf %131, %131 : vector<16x256xf32>
    %cst_40 = arith.constant dense<0.000000e+00> : vector<16xf32>
    %136 = vector.multi_reduction <add>, %135, %cst_40 [1] : vector<16x256xf32> to vector<16xf32>
    %137 = vector.shape_cast %136 : vector<16xf32> to vector<16x1xf32>
    %138 = arith.addf %119, %137 : vector<16x1xf32>
    %c255_i32_41 = arith.constant 255 : i32
    %139 = tpu.dynamic_rotate %87 by %c255_i32_41 dim 1 : vector<8x256xf32>, i32 -> vector<8x256xf32>
    %cst_42 = arith.constant 0.000000e+00 : f32
    %140 = vector.shape_cast %18 : vector<1x256xi1> to vector<1x256xi1>
    %141 = vector.broadcast %140 : vector<1x256xi1> to vector<8x256xi1>
    %142 = vector.broadcast %cst_42 : f32 to vector<8x256xf32>
    %143 = arith.select %141, %139, %142 : vector<8x256xi1>, vector<8x256xf32>
    %c240_i32_43 = arith.constant 240 : i32
    %144 = tpu.dynamic_rotate %86 by %c240_i32_43 dim 1 : vector<8x256xf32>, i32 -> vector<8x256xf32>
    %cst_44 = arith.constant 0.000000e+00 : f32
    %145 = vector.shape_cast %20 : vector<1x256xi1> to vector<1x256xi1>
    %146 = vector.broadcast %145 : vector<1x256xi1> to vector<8x256xi1>
    %147 = vector.broadcast %cst_44 : f32 to vector<8x256xf32>
    %148 = arith.select %146, %144, %147 : vector<8x256xi1>, vector<8x256xf32>
    %c239_i32_45 = arith.constant 239 : i32
    %149 = tpu.dynamic_rotate %85 by %c239_i32_45 dim 1 : vector<8x256xf32>, i32 -> vector<8x256xf32>
    %cst_46 = arith.constant 0.000000e+00 : f32
    %150 = vector.shape_cast %21 : vector<1x256xi1> to vector<1x256xi1>
    %151 = vector.broadcast %150 : vector<1x256xi1> to vector<8x256xi1>
    %152 = vector.broadcast %cst_46 : f32 to vector<8x256xf32>
    %153 = arith.select %151, %149, %152 : vector<8x256xi1>, vector<8x256xf32>
    %154 = tpu.concatenate %88, %143, %148, %153 in 0 : vector<8x256xf32>, vector<8x256xf32>, vector<8x256xf32>, vector<8x256xf32> -> vector<32x256xf32>
    %cst_47 = arith.constant dense<0.000000e+00> : vector<16x256xf32>
    %155 = tpu.matmul %89, %154, %cst_47 {dimension_numbers = #tpu.dot_dimension_numbers<[1], [0], [0], [1], [0, 0, 1, 1], [], []>} : vector<16x32xf32>, vector<32x256xf32>, vector<16x256xf32> -> vector<16x256xf32>
    %cst_48 = arith.constant dense<0.000000e+00> : vector<16xf32>
    %156 = vector.multi_reduction <add>, %155, %cst_48 [1] : vector<16x256xf32> to vector<16xf32>
    %157 = vector.shape_cast %156 : vector<16xf32> to vector<16x1xf32>
    %158 = arith.addf %134, %157 : vector<16x1xf32>
    %159 = arith.mulf %155, %155 : vector<16x256xf32>
    %cst_49 = arith.constant dense<0.000000e+00> : vector<16xf32>
    %160 = vector.multi_reduction <add>, %159, %cst_49 [1] : vector<16x256xf32> to vector<16xf32>
    %161 = vector.shape_cast %160 : vector<16xf32> to vector<16x1xf32>
    %162 = arith.addf %138, %161 : vector<16x1xf32>
    %163 = vector.extract_strided_slice %158 {offsets = [0, 0], sizes = [4, 1], strides = [1, 1]} : vector<16x1xf32> to vector<4x1xf32>
    %164 = vector.extract_strided_slice %158 {offsets = [4, 0], sizes = [4, 1], strides = [1, 1]} : vector<16x1xf32> to vector<4x1xf32>
    %165 = arith.addf %163, %164 : vector<4x1xf32>
    %166 = vector.extract_strided_slice %158 {offsets = [8, 0], sizes = [4, 1], strides = [1, 1]} : vector<16x1xf32> to vector<4x1xf32>
    %167 = arith.addf %165, %166 : vector<4x1xf32>
    %168 = vector.extract_strided_slice %158 {offsets = [12, 0], sizes = [4, 1], strides = [1, 1]} : vector<16x1xf32> to vector<4x1xf32>
    %169 = arith.addf %167, %168 : vector<4x1xf32>
    %170 = vector.extract_strided_slice %162 {offsets = [0, 0], sizes = [4, 1], strides = [1, 1]} : vector<16x1xf32> to vector<4x1xf32>
    %171 = vector.extract_strided_slice %162 {offsets = [4, 0], sizes = [4, 1], strides = [1, 1]} : vector<16x1xf32> to vector<4x1xf32>
    %172 = arith.addf %170, %171 : vector<4x1xf32>
    %173 = vector.extract_strided_slice %162 {offsets = [8, 0], sizes = [4, 1], strides = [1, 1]} : vector<16x1xf32> to vector<4x1xf32>
    %174 = arith.addf %172, %173 : vector<4x1xf32>
    %175 = vector.extract_strided_slice %162 {offsets = [12, 0], sizes = [4, 1], strides = [1, 1]} : vector<16x1xf32> to vector<4x1xf32>
    %176 = arith.addf %174, %175 : vector<4x1xf32>
    %cst_50 = arith.constant 4.096000e+03 : f32
    %177 = vector.broadcast %cst_50 : f32 to vector<4x1xf32>
    %178 = arith.divf %169, %177 : vector<4x1xf32>
    %cst_51 = arith.constant 4.096000e+03 : f32
    %179 = vector.broadcast %cst_51 : f32 to vector<4x1xf32>
    %180 = arith.divf %176, %179 : vector<4x1xf32>
    %181 = arith.mulf %178, %178 : vector<4x1xf32>
    %182 = arith.subf %180, %181 : vector<4x1xf32>
    %cst_52 = arith.constant 9.99999974E-6 : f32
    %183 = vector.broadcast %cst_52 : f32 to vector<4x1xf32>
    %184 = arith.addf %182, %183 : vector<4x1xf32>
    %185 = math.rsqrt %184 : vector<4x1xf32>
    %186 = tpu.concatenate %185, %185, %185, %185 in 0 : vector<4x1xf32>, vector<4x1xf32>, vector<4x1xf32>, vector<4x1xf32> -> vector<16x1xf32>
    %cst_53 = arith.constant 0.000000e+00 : f32
    %187 = vector.broadcast %cst_53 : f32 to vector<4x1xf32>
    %188 = arith.subf %187, %178 : vector<4x1xf32>
    %189 = arith.mulf %188, %185 : vector<4x1xf32>
    %190 = tpu.concatenate %189, %189, %189, %189 in 0 : vector<4x1xf32>, vector<4x1xf32>, vector<4x1xf32>, vector<4x1xf32> -> vector<16x1xf32>
    %191 = vector.broadcast %186 : vector<16x1xf32> to vector<16x256xf32>
    %192 = arith.mulf %93, %191 : vector<16x256xf32>
    %193 = vector.broadcast %190 : vector<16x1xf32> to vector<16x256xf32>
    %194 = arith.addf %192, %193 : vector<16x256xf32>
    %195 = arith.negf %194 : vector<16x256xf32>
    %196 = math.exp %195 : vector<16x256xf32>
    %cst_54 = arith.constant 1.000000e+00 : f32
    %197 = vector.broadcast %cst_54 : f32 to vector<16x256xf32>
    %198 = arith.addf %197, %196 : vector<16x256xf32>
    %199 = arith.divf %197, %198 : vector<16x256xf32>
    %200 = vector.extract_strided_slice %199 {offsets = [0, 0], sizes = [4, 256], strides = [1, 1]} : vector<16x256xf32> to vector<4x256xf32>
    %201 = vector.extract_strided_slice %199 {offsets = [4, 0], sizes = [4, 256], strides = [1, 1]} : vector<16x256xf32> to vector<4x256xf32>
    %202 = vector.extract_strided_slice %199 {offsets = [8, 0], sizes = [4, 256], strides = [1, 1]} : vector<16x256xf32> to vector<4x256xf32>
    %203 = vector.extract_strided_slice %199 {offsets = [12, 0], sizes = [4, 256], strides = [1, 1]} : vector<16x256xf32> to vector<4x256xf32>
    %204 = vector.broadcast %186 : vector<16x1xf32> to vector<16x256xf32>
    %205 = arith.mulf %112, %204 : vector<16x256xf32>
    %206 = vector.broadcast %190 : vector<16x1xf32> to vector<16x256xf32>
    %207 = arith.addf %205, %206 : vector<16x256xf32>
    %208 = arith.negf %207 : vector<16x256xf32>
    %209 = math.exp %208 : vector<16x256xf32>
    %cst_55 = arith.constant 1.000000e+00 : f32
    %210 = vector.broadcast %cst_55 : f32 to vector<16x256xf32>
    %211 = arith.addf %210, %209 : vector<16x256xf32>
    %212 = arith.divf %210, %211 : vector<16x256xf32>
    %213 = vector.extract_strided_slice %212 {offsets = [0, 0], sizes = [4, 256], strides = [1, 1]} : vector<16x256xf32> to vector<4x256xf32>
    %214 = vector.extract_strided_slice %212 {offsets = [4, 0], sizes = [4, 256], strides = [1, 1]} : vector<16x256xf32> to vector<4x256xf32>
    %215 = vector.extract_strided_slice %212 {offsets = [8, 0], sizes = [4, 256], strides = [1, 1]} : vector<16x256xf32> to vector<4x256xf32>
    %216 = vector.extract_strided_slice %212 {offsets = [12, 0], sizes = [4, 256], strides = [1, 1]} : vector<16x256xf32> to vector<4x256xf32>
    %217 = vector.broadcast %186 : vector<16x1xf32> to vector<16x256xf32>
    %218 = arith.mulf %131, %217 : vector<16x256xf32>
    %219 = vector.broadcast %190 : vector<16x1xf32> to vector<16x256xf32>
    %220 = arith.addf %218, %219 : vector<16x256xf32>
    %221 = arith.negf %220 : vector<16x256xf32>
    %222 = math.exp %221 : vector<16x256xf32>
    %cst_56 = arith.constant 1.000000e+00 : f32
    %223 = vector.broadcast %cst_56 : f32 to vector<16x256xf32>
    %224 = arith.addf %223, %222 : vector<16x256xf32>
    %225 = arith.divf %223, %224 : vector<16x256xf32>
    %226 = vector.extract_strided_slice %225 {offsets = [0, 0], sizes = [4, 256], strides = [1, 1]} : vector<16x256xf32> to vector<4x256xf32>
    %227 = vector.extract_strided_slice %225 {offsets = [4, 0], sizes = [4, 256], strides = [1, 1]} : vector<16x256xf32> to vector<4x256xf32>
    %228 = vector.extract_strided_slice %225 {offsets = [8, 0], sizes = [4, 256], strides = [1, 1]} : vector<16x256xf32> to vector<4x256xf32>
    %229 = vector.extract_strided_slice %225 {offsets = [12, 0], sizes = [4, 256], strides = [1, 1]} : vector<16x256xf32> to vector<4x256xf32>
    %230 = vector.broadcast %186 : vector<16x1xf32> to vector<16x256xf32>
    %231 = arith.mulf %155, %230 : vector<16x256xf32>
    %232 = vector.broadcast %190 : vector<16x1xf32> to vector<16x256xf32>
    %233 = arith.addf %231, %232 : vector<16x256xf32>
    %234 = arith.negf %233 : vector<16x256xf32>
    %235 = math.exp %234 : vector<16x256xf32>
    %cst_57 = arith.constant 1.000000e+00 : f32
    %236 = vector.broadcast %cst_57 : f32 to vector<16x256xf32>
    %237 = arith.addf %236, %235 : vector<16x256xf32>
    %238 = arith.divf %236, %237 : vector<16x256xf32>
    %239 = vector.extract_strided_slice %238 {offsets = [0, 0], sizes = [4, 256], strides = [1, 1]} : vector<16x256xf32> to vector<4x256xf32>
    %240 = vector.extract_strided_slice %238 {offsets = [4, 0], sizes = [4, 256], strides = [1, 1]} : vector<16x256xf32> to vector<4x256xf32>
    %241 = vector.extract_strided_slice %238 {offsets = [8, 0], sizes = [4, 256], strides = [1, 1]} : vector<16x256xf32> to vector<4x256xf32>
    %242 = vector.extract_strided_slice %238 {offsets = [12, 0], sizes = [4, 256], strides = [1, 1]} : vector<16x256xf32> to vector<4x256xf32>
    %c0_58 = arith.constant 0 : index
    %c0_59 = arith.constant 0 : index
    %c0_60 = arith.constant 0 : index
    %c0_61 = arith.constant 0 : index
    %243 = vector.load %arg4[%c0_58, %c0_59, %c0_60, %c0_61] : memref<1x16x4x256xf32, #tpu.memory_space<vmem>>, vector<1x1x4x256xf32>
    %244 = vector.shape_cast %243 : vector<1x1x4x256xf32> to vector<4x256xf32>
    %245 = vector.shape_cast %200 : vector<4x256xf32> to vector<1x1x4x256xf32>
    tpu.vector_store %arg4[%c0_58, %c0_59, %c0_60, %c0_61], %245 {strides = array<i32>} : memref<1x16x4x256xf32, #tpu.memory_space<vmem>>, vector<1x1x4x256xf32>,
    %c0_62 = arith.constant 0 : index
    %c1 = arith.constant 1 : index
    %c0_63 = arith.constant 0 : index
    %c0_64 = arith.constant 0 : index
    %246 = vector.load %arg4[%c0_62, %c1, %c0_63, %c0_64] : memref<1x16x4x256xf32, #tpu.memory_space<vmem>>, vector<1x1x4x256xf32>
    %247 = vector.shape_cast %246 : vector<1x1x4x256xf32> to vector<4x256xf32>
    %248 = vector.shape_cast %201 : vector<4x256xf32> to vector<1x1x4x256xf32>
    tpu.vector_store %arg4[%c0_62, %c1, %c0_63, %c0_64], %248 {strides = array<i32>} : memref<1x16x4x256xf32, #tpu.memory_space<vmem>>, vector<1x1x4x256xf32>,
    %c0_65 = arith.constant 0 : index
    %c2 = arith.constant 2 : index
    %c0_66 = arith.constant 0 : index
    %c0_67 = arith.constant 0 : index
    %249 = vector.load %arg4[%c0_65, %c2, %c0_66, %c0_67] : memref<1x16x4x256xf32, #tpu.memory_space<vmem>>, vector<1x1x4x256xf32>
    %250 = vector.shape_cast %249 : vector<1x1x4x256xf32> to vector<4x256xf32>
    %251 = vector.shape_cast %213 : vector<4x256xf32> to vector<1x1x4x256xf32>
    tpu.vector_store %arg4[%c0_65, %c2, %c0_66, %c0_67], %251 {strides = array<i32>} : memref<1x16x4x256xf32, #tpu.memory_space<vmem>>, vector<1x1x4x256xf32>,
    %c0_68 = arith.constant 0 : index
    %c3 = arith.constant 3 : index
    %c0_69 = arith.constant 0 : index
    %c0_70 = arith.constant 0 : index
    %252 = vector.load %arg4[%c0_68, %c3, %c0_69, %c0_70] : memref<1x16x4x256xf32, #tpu.memory_space<vmem>>, vector<1x1x4x256xf32>
    %253 = vector.shape_cast %252 : vector<1x1x4x256xf32> to vector<4x256xf32>
    %254 = vector.shape_cast %214 : vector<4x256xf32> to vector<1x1x4x256xf32>
    tpu.vector_store %arg4[%c0_68, %c3, %c0_69, %c0_70], %254 {strides = array<i32>} : memref<1x16x4x256xf32, #tpu.memory_space<vmem>>, vector<1x1x4x256xf32>,
    %c0_71 = arith.constant 0 : index
    %c4 = arith.constant 4 : index
    %c0_72 = arith.constant 0 : index
    %c0_73 = arith.constant 0 : index
    %255 = vector.load %arg4[%c0_71, %c4, %c0_72, %c0_73] : memref<1x16x4x256xf32, #tpu.memory_space<vmem>>, vector<1x1x4x256xf32>
    %256 = vector.shape_cast %255 : vector<1x1x4x256xf32> to vector<4x256xf32>
    %257 = vector.shape_cast %202 : vector<4x256xf32> to vector<1x1x4x256xf32>
    tpu.vector_store %arg4[%c0_71, %c4, %c0_72, %c0_73], %257 {strides = array<i32>} : memref<1x16x4x256xf32, #tpu.memory_space<vmem>>, vector<1x1x4x256xf32>,
    %c0_74 = arith.constant 0 : index
    %c5 = arith.constant 5 : index
    %c0_75 = arith.constant 0 : index
    %c0_76 = arith.constant 0 : index
    %258 = vector.load %arg4[%c0_74, %c5, %c0_75, %c0_76] : memref<1x16x4x256xf32, #tpu.memory_space<vmem>>, vector<1x1x4x256xf32>
    %259 = vector.shape_cast %258 : vector<1x1x4x256xf32> to vector<4x256xf32>
    %260 = vector.shape_cast %203 : vector<4x256xf32> to vector<1x1x4x256xf32>
    tpu.vector_store %arg4[%c0_74, %c5, %c0_75, %c0_76], %260 {strides = array<i32>} : memref<1x16x4x256xf32, #tpu.memory_space<vmem>>, vector<1x1x4x256xf32>,
    %c0_77 = arith.constant 0 : index
    %c6 = arith.constant 6 : index
    %c0_78 = arith.constant 0 : index
    %c0_79 = arith.constant 0 : index
    %261 = vector.load %arg4[%c0_77, %c6, %c0_78, %c0_79] : memref<1x16x4x256xf32, #tpu.memory_space<vmem>>, vector<1x1x4x256xf32>
    %262 = vector.shape_cast %261 : vector<1x1x4x256xf32> to vector<4x256xf32>
    %263 = vector.shape_cast %215 : vector<4x256xf32> to vector<1x1x4x256xf32>
    tpu.vector_store %arg4[%c0_77, %c6, %c0_78, %c0_79], %263 {strides = array<i32>} : memref<1x16x4x256xf32, #tpu.memory_space<vmem>>, vector<1x1x4x256xf32>,
    %c0_80 = arith.constant 0 : index
    %c7 = arith.constant 7 : index
    %c0_81 = arith.constant 0 : index
    %c0_82 = arith.constant 0 : index
    %264 = vector.load %arg4[%c0_80, %c7, %c0_81, %c0_82] : memref<1x16x4x256xf32, #tpu.memory_space<vmem>>, vector<1x1x4x256xf32>
    %265 = vector.shape_cast %264 : vector<1x1x4x256xf32> to vector<4x256xf32>
    %266 = vector.shape_cast %216 : vector<4x256xf32> to vector<1x1x4x256xf32>
    tpu.vector_store %arg4[%c0_80, %c7, %c0_81, %c0_82], %266 {strides = array<i32>} : memref<1x16x4x256xf32, #tpu.memory_space<vmem>>, vector<1x1x4x256xf32>,
    %c0_83 = arith.constant 0 : index
    %c8 = arith.constant 8 : index
    %c0_84 = arith.constant 0 : index
    %c0_85 = arith.constant 0 : index
    %267 = vector.load %arg4[%c0_83, %c8, %c0_84, %c0_85] : memref<1x16x4x256xf32, #tpu.memory_space<vmem>>, vector<1x1x4x256xf32>
    %268 = vector.shape_cast %267 : vector<1x1x4x256xf32> to vector<4x256xf32>
    %269 = vector.shape_cast %226 : vector<4x256xf32> to vector<1x1x4x256xf32>
    tpu.vector_store %arg4[%c0_83, %c8, %c0_84, %c0_85], %269 {strides = array<i32>} : memref<1x16x4x256xf32, #tpu.memory_space<vmem>>, vector<1x1x4x256xf32>,
    %c0_86 = arith.constant 0 : index
    %c9 = arith.constant 9 : index
    %c0_87 = arith.constant 0 : index
    %c0_88 = arith.constant 0 : index
    %270 = vector.load %arg4[%c0_86, %c9, %c0_87, %c0_88] : memref<1x16x4x256xf32, #tpu.memory_space<vmem>>, vector<1x1x4x256xf32>
    %271 = vector.shape_cast %270 : vector<1x1x4x256xf32> to vector<4x256xf32>
    %272 = vector.shape_cast %227 : vector<4x256xf32> to vector<1x1x4x256xf32>
    tpu.vector_store %arg4[%c0_86, %c9, %c0_87, %c0_88], %272 {strides = array<i32>} : memref<1x16x4x256xf32, #tpu.memory_space<vmem>>, vector<1x1x4x256xf32>,
    %c0_89 = arith.constant 0 : index
    %c10 = arith.constant 10 : index
    %c0_90 = arith.constant 0 : index
    %c0_91 = arith.constant 0 : index
    %273 = vector.load %arg4[%c0_89, %c10, %c0_90, %c0_91] : memref<1x16x4x256xf32, #tpu.memory_space<vmem>>, vector<1x1x4x256xf32>
    %274 = vector.shape_cast %273 : vector<1x1x4x256xf32> to vector<4x256xf32>
    %275 = vector.shape_cast %239 : vector<4x256xf32> to vector<1x1x4x256xf32>
    tpu.vector_store %arg4[%c0_89, %c10, %c0_90, %c0_91], %275 {strides = array<i32>} : memref<1x16x4x256xf32, #tpu.memory_space<vmem>>, vector<1x1x4x256xf32>,
    %c0_92 = arith.constant 0 : index
    %c11 = arith.constant 11 : index
    %c0_93 = arith.constant 0 : index
    %c0_94 = arith.constant 0 : index
    %276 = vector.load %arg4[%c0_92, %c11, %c0_93, %c0_94] : memref<1x16x4x256xf32, #tpu.memory_space<vmem>>, vector<1x1x4x256xf32>
    %277 = vector.shape_cast %276 : vector<1x1x4x256xf32> to vector<4x256xf32>
    %278 = vector.shape_cast %240 : vector<4x256xf32> to vector<1x1x4x256xf32>
    tpu.vector_store %arg4[%c0_92, %c11, %c0_93, %c0_94], %278 {strides = array<i32>} : memref<1x16x4x256xf32, #tpu.memory_space<vmem>>, vector<1x1x4x256xf32>,
    %c0_95 = arith.constant 0 : index
    %c12 = arith.constant 12 : index
    %c0_96 = arith.constant 0 : index
    %c0_97 = arith.constant 0 : index
    %279 = vector.load %arg4[%c0_95, %c12, %c0_96, %c0_97] : memref<1x16x4x256xf32, #tpu.memory_space<vmem>>, vector<1x1x4x256xf32>
    %280 = vector.shape_cast %279 : vector<1x1x4x256xf32> to vector<4x256xf32>
    %281 = vector.shape_cast %228 : vector<4x256xf32> to vector<1x1x4x256xf32>
    tpu.vector_store %arg4[%c0_95, %c12, %c0_96, %c0_97], %281 {strides = array<i32>} : memref<1x16x4x256xf32, #tpu.memory_space<vmem>>, vector<1x1x4x256xf32>,
    %c0_98 = arith.constant 0 : index
    %c13 = arith.constant 13 : index
    %c0_99 = arith.constant 0 : index
    %c0_100 = arith.constant 0 : index
    %282 = vector.load %arg4[%c0_98, %c13, %c0_99, %c0_100] : memref<1x16x4x256xf32, #tpu.memory_space<vmem>>, vector<1x1x4x256xf32>
    %283 = vector.shape_cast %282 : vector<1x1x4x256xf32> to vector<4x256xf32>
    %284 = vector.shape_cast %229 : vector<4x256xf32> to vector<1x1x4x256xf32>
    tpu.vector_store %arg4[%c0_98, %c13, %c0_99, %c0_100], %284 {strides = array<i32>} : memref<1x16x4x256xf32, #tpu.memory_space<vmem>>, vector<1x1x4x256xf32>,
    %c0_101 = arith.constant 0 : index
    %c14 = arith.constant 14 : index
    %c0_102 = arith.constant 0 : index
    %c0_103 = arith.constant 0 : index
    %285 = vector.load %arg4[%c0_101, %c14, %c0_102, %c0_103] : memref<1x16x4x256xf32, #tpu.memory_space<vmem>>, vector<1x1x4x256xf32>
    %286 = vector.shape_cast %285 : vector<1x1x4x256xf32> to vector<4x256xf32>
    %287 = vector.shape_cast %241 : vector<4x256xf32> to vector<1x1x4x256xf32>
    tpu.vector_store %arg4[%c0_101, %c14, %c0_102, %c0_103], %287 {strides = array<i32>} : memref<1x16x4x256xf32, #tpu.memory_space<vmem>>, vector<1x1x4x256xf32>,
    %c0_104 = arith.constant 0 : index
    %c15 = arith.constant 15 : index
    %c0_105 = arith.constant 0 : index
    %c0_106 = arith.constant 0 : index
    %288 = vector.load %arg4[%c0_104, %c15, %c0_105, %c0_106] : memref<1x16x4x256xf32, #tpu.memory_space<vmem>>, vector<1x1x4x256xf32>
    %289 = vector.shape_cast %288 : vector<1x1x4x256xf32> to vector<4x256xf32>
    %290 = vector.shape_cast %242 : vector<4x256xf32> to vector<1x1x4x256xf32>
    tpu.vector_store %arg4[%c0_104, %c15, %c0_105, %c0_106], %290 {strides = array<i32>} : memref<1x16x4x256xf32, #tpu.memory_space<vmem>>, vector<1x1x4x256xf32>,
    return
  }
  func.func @transform_0(%arg0: i32) -> (i32, i32, i32) {
    %c0_i32 = arith.constant 0 : i32
    %c0_i32_0 = arith.constant 0 : i32
    %c0_i32_1 = arith.constant 0 : i32
    return %arg0, %c0_i32, %c0_i32_0 : i32, i32, i32
  }
  func.func @transform_1(%arg0: i32) -> (i32, i32) {
    %c0_i32 = arith.constant 0 : i32
    %c0_i32_0 = arith.constant 0 : i32
    %c0_i32_1 = arith.constant 0 : i32
    return %c0_i32, %c0_i32_0 : i32, i32
  }
  func.func @transform_2(%arg0: i32) -> (i32, i32) {
    %c0_i32 = arith.constant 0 : i32
    %c0_i32_0 = arith.constant 0 : i32
    %c0_i32_1 = arith.constant 0 : i32
    return %c0_i32, %c0_i32_0 : i32, i32
  }
  func.func @transform_3(%arg0: i32) -> (i32, i32, i32, i32) {
    %c0_i32 = arith.constant 0 : i32
    %c0_i32_0 = arith.constant 0 : i32
    %c0_i32_1 = arith.constant 0 : i32
    %c0_i32_2 = arith.constant 0 : i32
    return %arg0, %c0_i32, %c0_i32_0, %c0_i32_1 : i32, i32, i32, i32
  }
}

</mosaic_0001>

<bundles_post_ra>
// kernel: conv_transpose_decoder.1
= control target key start
LH: loop header
LB: loop body
LE: loop exit
PB: predicated region body
PF: predicated region fallthrough
CT: control target
= control target key end

     0   :  { %s1527_s12 = smov 0   ;;  %s1902_s0 = inlined_call_operand.vmem [shape: f32[2,16,256], index: 0, kind: input, shape index: {}]   ;;  %s1903_s1 = inlined_call_operand.vmem [shape: f32[32,64], index: 1, kind: input, shape index: {}]   ;;  %s1904_s2 = inlined_call_operand.vmem [shape: f32[16,32], index: 2, kind: input, shape index: {}]   ;;  %s1905_s3 = inlined_call_operand.vmem [shape: f32[2,16,4,256], index: 3, kind: output, shape index: {}]  }
   0x1 LB: > { %s1211_s13 = sadd.s32 4294967295, %s1499_s12   ;;  %p1215_p0 = scmp.ge.s32.totalorder %s1499_s12, 1  ;;  %s1499_s12 = sphi %s1527_s12, %s13_s12  }
   0x2   : > { %p137_p1 = scmp.lt.s32.totalorder %s1499_s12, 3 }
   0x4   : > { %p138_p2 = pnand %p1215_p0, %p137_p1 }
   0x5   : > { %p161_p3 = scmp.lt.s32.totalorder (!%p138_p2), %s1211_s13, 1  ;;  %s1501_s18 = smov (!%p138_p2), 112   ;;  %v1503_v8 = vmov (!%p138_p2), 0.0   ;;  %v171_v9 = vlaneseq (!%p138_p2)  ;;  %v208_v54 = vld [vmem:[%s1903_s1] sm:$0xff] (!%p138_p2)  ;;  %vm275_vm11 = vcmask (!%p138_p2), 523264   ;;  %v209_v55 = vld [vmem:[%s1903_s1 + $0x8] sm:$0xff] (!%p138_p2) }
   0x6   : > { %141 = sbr.rel (%p138_p2) target bundleno = 1417 (0x589), region = 32  ;;  %s1502_s19 = smov (!%p138_p2), 127   ;;  %352 = vmatprep.mubr.f32.mxu0 (!%p138_p2), %v1503_v8  ;;  %539 = vmatprep.mubr.f32.mxu1 (!%p138_p2), %v1503_v8  ;;  %v210_v56 = vld [vmem:[%s1903_s1 + $0x10] sm:$0xff] (!%p138_p2)  ;;  %v211_v57 = vld [vmem:[%s1903_s1 + $0x18] sm:$0xff] (!%p138_p2)  ;;  %vm468_vm12 = vcmask (!%p138_p2), 261120   ;;  %vm1506_vm13 = vmmov (!%p138_p2), 1  }
   0x7   : > { %s1504_s20 = smov (!%p138_p2), 111   ;;  %v1549_v10 = vand.u32 (!%p138_p2), 127, %v171_v9 }
   0x9   : > { %v1552_v11 = vadd.s32 (!%p138_p2), 128, %v1549_v10  ;;  %v178_v15 = vand.u32 (!%p138_p2), 15, %v1549_v10  ;;  %vm241_vm0 = vcmp.lt.s32.totalorder (!%p138_p2), %v1549_v10, 112  ;;  %vm220_vm1 = vcmp.lt.s32.totalorder (!%p138_p2), %v1549_v10, 127 }
   0xa   : > { %vm262_vm5 = vcmp.lt.s32.totalorder (!%p138_p2), %v1549_v10, 111 }
   0xb   : > { %v185_v14 = vand.u32 (!%p138_p2), 15, %v1552_v11  ;;  %vm1562_vm3 = vcmp.ne.s32.totalorder (!%p138_p2), %v178_v15, 15  ;;  %vm201_vm4 = vcmp.lt.s32.totalorder (!%p138_p2), %v1552_v11, 240 }
   0xc   : > { %vm1296_vm7 = vmpackc.low (!%p138_p2), %vm1562_vm3, %vm1562_vm3 }
   0xd   : > { %s1919_s13 = smov (!%p161_p3, %s1211_s13), 1  ;;  %vm1558_vm2 = vcmp.ne.s32.totalorder %v185_v14, 15  ;;  %vm1589_vm8 = vmpackc.low %vm201_vm4, %vm201_vm4 }
   0xe   : > { %s1286_s14 = sshll.u32 %s1919_s13, 5  ;;  %vm1293_vm6 = vmpackc.low %vm1558_vm2, %vm1558_vm2  ;;  %s1287_s6 = sshll.u32 %s1919_s13, 7 }
   0xf   : > { %s165_s17 = scalar_lea.vmem %s1902_s0, %s1286_s14  ;;  %vm1603_vm9 = vmand %vm1558_vm2, %vm201_vm4  ;;  %s1881_s9 = scalar_lea.vmem %s1905_s3, %s1287_s6 }
  0x10   : > { %v204_v0 = vld [vmem:[%s165_s17] sm:$0xff]  ;;  %v206_v1 = vld [vmem:[%s165_s17 + $0x10] sm:$0xff]  ;;  %v205_v2 = vld [vmem:[%s165_s17 + $0x8] sm:$0xff] }
  0x11   : > { %v1378_v3 = vpack.i.bf16 %v206_v1, %v204_v0  ;;  %v207_v4 = vld [vmem:[%s165_s17 + $0x18] sm:$0xff]  ;;  %v1290_v5 = vpack.c.bf16 %v206_v1, %v204_v0  ;;  %vm1304_vm10 = vmpackc.low %vm1603_vm9, %vm1603_vm9 }
  0x12   : > { %v1288_v6 = vpack.c.bf16 %v207_v4, %v205_v2  ;;  %v1383_v7 = vpack.i.bf16 %v207_v4, %v205_v2  ;;  %vm1677_vm14 = vmpackc.low %vm1558_vm2, %vm1506_vm13 }
  0x13   : > { %1379 = vrot.lane.b32.xlu1 %v1378_v3, %s1501_s18  ;;  %1369 = vrot.lane.b32.xlu0 %v1378_v3, %s1502_s19  ;;  %vm1683_vm15 = vmpackc.low %vm1562_vm3, %vm1506_vm13 }
  0x14   : > { %1289 = vmatprep.subr.bf16.mxu0 %v1288_v6 }
  0x15   : > { %1291 = vmatpush1.bf16.msra.mxu0 %v1290_v5 }
  0x17   : > { %1384 = vrot.lane.b32.xlu1 %v1383_v7, %s1501_s18  ;;  %1374 = vrot.lane.b32.xlu0 %v1383_v7, %s1502_s19 }
  0x1b   : > { %1394 = vrot.lane.b32.xlu1 %v1383_v7, %s1504_s20  ;;  %1389 = vrot.lane.b32.xlu0 %v1378_v3, %s1504_s20 }
  0x85   : > { %v1380_v12 = vpop.permute.xlu1 %1379  ;;  %v1370_v13 = vpop.permute.xlu0 %1369 }
  0x86   : > { %v1381_v16 = vunpack.i.l.bf16 %v1380_v12  ;;  %v1382_v17 = vunpack.i.h.bf16 %v1380_v12  ;;  %v1372_v18 = vunpack.i.h.bf16 %v1370_v13  ;;  %v1371_v19 = vunpack.i.l.bf16 %v1370_v13 }
  0x89   : > { %v1385_v20 = vpop.permute.xlu1 %1384  ;;  %v1375_v21 = vpop.permute.xlu0 %1374 }
  0x8a   : > { %v1387_v23 = vunpack.i.h.bf16 %v1385_v20  ;;  %v1386_v24 = vunpack.i.l.bf16 %v1385_v20  ;;  %v1377_v25 = vunpack.i.h.bf16 %v1375_v21  ;;  %v1376_v26 = vunpack.i.l.bf16 %v1375_v21 }
  0x8b   : > { %v1505_v21 = vmov 0  }
  0x8c   : > { %v244_v28 = vsel %vm241_vm0, %v1386_v24, %v1381_v16  ;;  %v221_v29 = vsel %vm220_vm1, %v1371_v19, %v1376_v26  ;;  %v222_v30 = vsel %vm220_vm1, %v1372_v18, %v1377_v25  ;;  %v245_v31 = vsel %vm241_vm0, %v1387_v23, %v1382_v17  ;;  %1398 = vset.pattern.permute.xlu1 %v1505_v21 }
  0x8d   : > { %v223_v32 = vsel %vm220_vm1, %v1376_v26, %v1371_v19  ;;  %v224_v33 = vsel %vm220_vm1, %v1377_v25, %v1372_v18  ;;  %v1295_v34 = vpack.c.bf16 %v222_v30, %v221_v29  ;;  %v1395_v35 = vpop.permute.xlu1 %1394  ;;  %v1390_v36 = vpop.permute.xlu0 %1389  ;;  %v1298_v43 = vpack.c.bf16 %v245_v31, %v244_v28  ;;  %1399 = vset.pattern.permute.xlu0 %v1505_v21 }
  0x8e   : > { %v1292_v37 = vpack.c.bf16 %v224_v33, %v223_v32  ;;  %v1397_v38 = vunpack.i.h.bf16 %v1395_v35  ;;  %v1396_v39 = vunpack.i.l.bf16 %v1395_v35  ;;  %v1392_v40 = vunpack.i.h.bf16 %v1390_v36 }
  0x8f   : > { %v1391_v41 = vunpack.i.l.bf16 %v1390_v36  ;;  %v242_v45 = vsel %vm241_vm0, %v1381_v16, %v1386_v24  ;;  %v243_v46 = vsel %vm241_vm0, %v1382_v17, %v1387_v23 }
  0x90   : > { %1294 = vmatprep.subr.msk.bf16.mxu0 %vm1293_vm6, %v1292_v37  ;;  %v266_v44 = vsel %vm262_vm5, %v1397_v38, %v1392_v40  ;;  %v264_v49 = vsel %vm262_vm5, %v1392_v40, %v1397_v38  ;;  %v1301_v52 = vpack.c.bf16 %v243_v46, %v242_v45 }
  0x91   : > { %1297 = vmatpush1.bf16.msk.msra.mxu0 %vm1296_vm7, %v1295_v34  ;;  %v265_v48 = vsel %vm262_vm5, %v1396_v39, %v1391_v41  ;;  %v263_v50 = vsel %vm262_vm5, %v1391_v41, %v1396_v39 }
  0x92   : > { %v1303_v51 = vpack.c.bf16 %v266_v44, %v265_v48  ;;  %1300 = vmatprep.subr.msk.bf16.mxu0 %vm1589_vm8, %v1298_v43  ;;  %v1306_v53 = vpack.c.bf16 %v264_v49, %v263_v50 }
  0x95   : > { %1302 = vmatpush1.bf16.msra.mxu0 %v1301_v52 }
  0x96   : > { %1305 = vmatprep.subr.msk.bf16.mxu0 %vm1304_vm10, %v1303_v51 }
  0x99   : > { %1308 = vmatpush1.bf16.msk.msra.mxu0 %vm1296_vm7, %v1306_v53 }
  0x9c   : > { %1230 = vmatmul.mubr.msk.f32.vlgmr.msra.gmra.mrb[0].mxu0 %vm275_vm11, %v208_v54 }
  0x9d   : > { %358 = vmatprep.mubr.f32.mxu0 %v1503_v8 }
  0xa0   : > { %1231 = vmatmul.mubr.msk.f32.gmra.mrb[2].mxu0 %vm275_vm11, %v209_v55 }
  0xa1   : > { %364 = vmatprep.mubr.f32.mxu0 %v1503_v8 }
  0xa4   : > { %1232 = vmatmul.mubr.msk.f32.gmra.mrb[4].mxu0 %vm275_vm11, %v210_v56 }
  0xa5   : > { %370 = vmatprep.mubr.f32.mxu0 %v1503_v8 }
  0xa8   : > { %1233 = vmatmul.mubr.msk.f32.gmra.mrb[6].mxu0 %vm275_vm11, %v211_v57 }
  0xa9   : > { %870 = vmatprep.mubr.f32.mxu0 %v1503_v8 }
 0x16f   : > { %v1644_v58 = vpop.f32.mrb[0].mxu0 }
 0x170   : > { %v356_v59 = vpop.f32.mrb[1].mxu0  ;;  %v393_v60 = vmul.f32 %v1644_v58, %v1644_v58 }
 0x171   : > { %v377_v61 = vadd.f32 %v356_v59, %v1644_v58  ;;  %v394_v62 = vmul.f32 %v356_v59, %v356_v59 }
 0x173   : > { %378 = vadd.xlane.f32.xlu0 %v377_v61  ;;  %v360_v63 = vpop.f32.mrb[2].mxu0  ;;  %v401_v0 = vadd.f32 %v394_v62, %v393_v60 }
 0x174   : > { %v362_v1 = vpop.f32.mrb[3].mxu0  ;;  %v395_v2 = vmul.f32 %v360_v63, %v360_v63 }
 0x175   : > { %v380_v3 = vadd.f32 %v362_v1, %v360_v63  ;;  %v396_v4 = vmul.f32 %v362_v1, %v362_v1 }
 0x177   : > { %402 = vadd.xlane.f32.xlu0 %v401_v0  ;;  %381 = vadd.xlane.f32.xlu1 %v380_v3  ;;  %v366_v5 = vpop.f32.mrb[4].mxu0  ;;  %v404_v6 = vadd.f32 %v396_v4, %v395_v2 }
 0x178   : > { %v368_v7 = vpop.f32.mrb[5].mxu0  ;;  %v397_v9 = vmul.f32 %v366_v5, %v366_v5 }
 0x179   : > { %v383_v12 = vadd.f32 %v368_v7, %v366_v5  ;;  %v398_v13 = vmul.f32 %v368_v7, %v368_v7 }
 0x17b   : > { %405 = vadd.xlane.f32.xlu1 %v404_v6  ;;  %384 = vadd.xlane.f32.xlu0 %v383_v12  ;;  %v372_v14 = vpop.f32.mrb[6].mxu0  ;;  %v407_v15 = vadd.f32 %v398_v13, %v397_v9 }
 0x17c   : > { %v374_v16 = vpop.f32.mrb[7].mxu0  ;;  %v399_v17 = vmul.f32 %v372_v14, %v372_v14 }
 0x17d   : > { %v386_v18 = vadd.f32 %v374_v16, %v372_v14  ;;  %v400_v19 = vmul.f32 %v374_v16, %v374_v16 }
 0x17f   : > { %408 = vadd.xlane.f32.xlu1 %v407_v15  ;;  %387 = vadd.xlane.f32.xlu0 %v386_v18  ;;  %v410_v20 = vadd.f32 %v400_v19, %v399_v17  ;;  %v1655_v19 = vld [vmem:[%s1904_s2] sm:$0xff] }
 0x183   : > { %411 = vadd.xlane.f32.xlu0 %v410_v20  ;;  %v1664_v20 = vld [vmem:[%s1904_s2 + $0x8] sm:$0xff] }
 0x200   : > { %v379_v23 = vpop.xlane.xlu0 %378 }
 0x204   : > { %v403_v24 = vpop.xlane.xlu0 %402  ;;  %v382_v25 = vpop.xlane.xlu1 %381 }
 0x205   : > { %v417_v29 = vadd.f32 %v382_v25, %v379_v23 }
 0x208   : > { %v406_v26 = vpop.xlane.xlu1 %405  ;;  %v385_v28 = vpop.xlane.xlu0 %384 }
 0x209   : > { %v418_v30 = vadd.f32 %v417_v29, %v385_v28  ;;  %v420_v33 = vadd.f32 %v406_v26, %v403_v24 }
 0x20c   : > { %v409_v31 = vpop.xlane.xlu1 %408  ;;  %v388_v32 = vpop.xlane.xlu0 %387 }
 0x20d   : > { %v419_v34 = vadd.f32 %v418_v30, %v388_v32  ;;  %v421_v35 = vadd.f32 %v420_v33, %v409_v31 }
 0x20f   : > { %v424_v36 = vmul.f32 0.0009765625, %v419_v34 }
 0x210   : > { %v412_v37 = vpop.xlane.xlu0 %411 }
 0x211   : > { %v422_v38 = vadd.f32 %v421_v35, %v412_v37  ;;  %v426_v39 = vmul.f32 %v424_v36, %v424_v36  ;;  %v430_v44 = vsub.f32 0.0, %v424_v36 }
 0x213   : > { %v425_v40 = vmul.f32 0.0009765625, %v422_v38 }
 0x215   : > { %v427_v41 = vsub.f32 %v425_v40, %v426_v39 }
 0x217   : > { %v428_v43 = vadd.f32 1e-05, %v427_v41 }
 0x219   : > { %1425 = vrsqrt.f32 %v428_v43 }
 0x223   : > { %v1426_v45 = vpop.eup %1425 }
 0x224   : > { %434 = vperm.xlu1 %1398, %v1426_v45   ;;  %v431_v46 = vmul.f32 %v1426_v45, %v430_v44 }
 0x226   : > { %447 = vperm.xlu0 %1399, %v431_v46  }
 0x2a3   : > { %v435_v48 = vpop.permute.xlu1 %434 }
 0x2a4   : > { %v438_v49 = vmul.f32 %v435_v48, %v356_v59  ;;  %v440_v50 = vmul.f32 %v435_v48, %v362_v1  ;;  %v437_v51 = vmul.f32 %v435_v48, %v1644_v58  ;;  %v439_v52 = vmul.f32 %v435_v48, %v360_v63 }
 0x2a5   : > { %v448_v53 = vpop.permute.xlu0 %447  ;;  %v442_v54 = vmul.f32 %v435_v48, %v368_v7  ;;  %v444_v55 = vmul.f32 %v435_v48, %v374_v16  ;;  %v441_v56 = vmul.f32 %v435_v48, %v366_v5  ;;  %v443_v57 = vmul.f32 %v435_v48, %v372_v14 }
 0x2a6   : > { %v451_v60 = vadd.f32 %v448_v53, %v438_v49  ;;  %v453_v61 = vadd.f32 %v448_v53, %v440_v50  ;;  %v450_v62 = vadd.f32 %v448_v53, %v437_v51  ;;  %v452_v0 = vadd.f32 %v448_v53, %v439_v52 }
 0x2a7   : > { %v455_v2 = vadd.f32 %v448_v53, %v442_v54  ;;  %v457_v3 = vadd.f32 %v448_v53, %v444_v55  ;;  %v454_v4 = vadd.f32 %v448_v53, %v441_v56  ;;  %v456_v6 = vadd.f32 %v448_v53, %v443_v57 }
 0x2a8   : > { %v459_v9 = vmax.f32 %v451_v60, 0.0  ;;  %v461_v12 = vmax.f32 %v453_v61, 0.0  ;;  %v458_v59 = vmax.f32 %v450_v62, 0.0  ;;  %v460_v1 = vmax.f32 %v452_v0, 0.0 }
 0x2a9   : > { %v463_v13 = vmax.f32 %v455_v2, 0.0  ;;  %v465_v58 = vmax.f32 %v457_v3, 0.0  ;;  %v462_v63 = vmax.f32 %v454_v4, 0.0  ;;  %v464_v14 = vmax.f32 %v456_v6, 0.0 }
 0x2aa   : > { %v1309_v15 = vpack.c.bf16 %v461_v12, %v459_v9  ;;  %v1400_v7 = vpack.i.bf16 %v459_v9, %v458_v59  ;;  %v1311_v16 = vpack.c.bf16 %v460_v1, %v458_v59  ;;  %v1415_v21 = vpack.i.bf16 %v461_v12, %v460_v1 }
 0x2ab   : > { %v1405_v5 = vpack.i.bf16 %v463_v13, %v462_v63  ;;  %v1313_v17 = vpack.c.bf16 %v465_v58, %v463_v13  ;;  %v1315_v18 = vpack.c.bf16 %v464_v14, %v462_v63 }
 0x2ac   : > { %1310 = vmatprep.subr.bf16.mxu1 %v1309_v15  ;;  %1401 = vrot.lane.b32.xlu1 %v1400_v7, %s1502_s19 }
 0x2ad   : > { %1312 = vmatpush1.bf16.msra.mxu1 %v1311_v16 }
 0x2ae   : > { %1314 = vmatprep.subr.bf16.mxu1 %v1313_v17 }
 0x2b0   : > { %1406 = vrot.lane.b32.xlu1 %v1405_v5, %s1502_s19 }
 0x2b1   : > { %1316 = vmatpush1.bf16.msra.mxu1 %v1315_v18 }
 0x2b4   : > { %1411 = vrot.lane.b32.xlu1 %v1400_v7, %s1501_s18  ;;  %1234 = vmatmul.mubr.msk.f32.vlgmr.msra.gmra.mrb[0].mxu1 %vm468_vm12, %v1655_v19 }
 0x2b5   : > { %545 = vmatprep.mubr.f32.mxu1 %v1503_v8 }
 0x2b8   : > { %1416 = vrot.lane.b32.xlu1 %v1415_v21, %s1501_s18  ;;  %1235 = vmatmul.mubr.msk.f32.gmra.mrb[2].mxu1 %vm468_vm12, %v1664_v20 }
 0x2b9   : > { %652 = vmatprep.mubr.f32.mxu1 %v1503_v8 }
 0x2bc   : > { %1421 = vrot.lane.b32.xlu1 %v1400_v7, %s1504_s20 }
 0x31e   : > { %v1402_v23 = vpop.permute.xlu1 %1401 }
 0x31f   : > { %v1404_v24 = vunpack.i.h.bf16 %v1402_v23  ;;  %v1403_v25 = vunpack.i.l.bf16 %v1402_v23 }
 0x321   : > { %v576_v26 = vsel %vm220_vm1, %v1403_v25, %v1404_v24  ;;  %v577_v28 = vsel %vm220_vm1, %v1404_v24, %v1403_v25 }
 0x322   : > { %v1317_v30 = vpack.c.bf16 %v577_v28, %v461_v12  ;;  %v1320_v31 = vpack.c.bf16 %v576_v26, %v460_v1  ;;  %v1407_v32 = vpop.permute.xlu1 %1406 }
 0x323   : > { %v1409_v34 = vunpack.i.h.bf16 %v1407_v32  ;;  %v1408_v35 = vunpack.i.l.bf16 %v1407_v32 }
 0x324   : > { %1319 = vmatprep.subr.msk.bf16.mxu1 %vm1677_vm14, %v1317_v30 }
 0x325   : > { %v584_v22 = vsel %vm220_vm1, %v1408_v35, %v1409_v34  ;;  %v585_v36 = vsel %vm220_vm1, %v1409_v34, %v1408_v35  ;;  %1322 = vmatpush1.bf16.msk.msra.mxu1 %vm1683_vm15, %v1320_v31  ;;  %vm931_vm1 = vcmask 1043456  }
 0x326   : > { %v1323_v37 = vpack.c.bf16 %v585_v36, %v465_v58  ;;  %v1326_v27 = vpack.c.bf16 %v584_v22, %v464_v14  ;;  %v1412_v38 = vpop.permute.xlu1 %1411 }
 0x327   : > { %v1414_v39 = vunpack.i.h.bf16 %v1412_v38  ;;  %v1413_v40 = vunpack.i.l.bf16 %v1412_v38 }
 0x328   : > { %1325 = vmatprep.subr.msk.bf16.mxu1 %vm1677_vm14, %v1323_v37  ;;  %1340 = vmatprep.subr.msk.bf16.mxu0 %vm1677_vm14, %v1323_v37 }
 0x329   : > { %1328 = vmatpush1.bf16.msk.msra.mxu1 %vm1683_vm15, %v1326_v27  ;;  %1343 = vmatpush1.bf16.msk.msra.mxu0 %vm1683_vm15, %v1326_v27  ;;  %v689_v45 = vsel %vm241_vm0, %v1413_v40, %v1414_v39  ;;  %v690_v46 = vsel %vm241_vm0, %v1414_v39, %v1413_v40 }
 0x32a   : > { %v1417_v41 = vpop.permute.xlu1 %1416  ;;  %1330 = vmatprep.subr.bf16.mxu1 %v1313_v17 }
 0x32b   : > { %v1419_v43 = vunpack.i.h.bf16 %v1417_v41  ;;  %v1418_v44 = vunpack.i.l.bf16 %v1417_v41 }
 0x32c   : > { %1240 = vmatmul.mubr.msk.f32.vlgmr.msra.gmra.mrb[4].mxu1 %vm468_vm12, %v1655_v19 }
 0x32d   : > { %v697_v48 = vsel %vm241_vm0, %v1418_v44, %v1419_v43  ;;  %v698_v49 = vsel %vm241_vm0, %v1419_v43, %v1418_v44  ;;  %1332 = vmatpush1.bf16.msra.mxu1 %v1315_v18  ;;  %658 = vmatprep.mubr.f32.mxu1 %v1503_v8  ;;  %vm1345_vm0 = vmpackc.low %vm1603_vm9, %vm201_vm4 }
 0x32e   : > { %v1333_v50 = vpack.c.bf16 %v698_v49, %v690_v46  ;;  %v1336_v51 = vpack.c.bf16 %v697_v48, %v689_v45  ;;  %v1422_v52 = vpop.permute.xlu1 %1421 }
 0x32f   : > { %v1424_v53 = vunpack.i.h.bf16 %v1422_v52  ;;  %v1423_v54 = vunpack.i.l.bf16 %v1422_v52 }
 0x330   : > { %1241 = vmatmul.mubr.msk.f32.gmra.mrb[6].mxu1 %vm468_vm12, %v1664_v20  ;;  %1335 = vmatprep.subr.msk.bf16.mxu1 %vm1589_vm8, %v1333_v50 }
 0x331   : > { %v802_v55 = vsel %vm262_vm5, %v1423_v54, %v1424_v53  ;;  %v803_v56 = vsel %vm262_vm5, %v1424_v53, %v1423_v54  ;;  %1337 = vmatpush1.bf16.msra.mxu1 %v1336_v51  ;;  %765 = vmatprep.mubr.f32.mxu1 %v1503_v8 }
 0x332   : > { %v1344_v57 = vpack.c.bf16 %v803_v56, %v698_v49  ;;  %v1347_v60 = vpack.c.bf16 %v802_v55, %v697_v48  ;;  %1350 = vmatprep.subr.msk.bf16.mxu1 %vm1677_vm14, %v1323_v37 }
 0x334   : > { %1244 = vmatmul.mubr.msk.f32.vlgmr.msra.gmra.mrb[8].mxu1 %vm468_vm12, %v1655_v19  ;;  %1346 = vmatprep.subr.msk.bf16.mxu0 %vm1345_vm0, %v1344_v57 }
 0x335   : > { %1352 = vmatpush1.bf16.msk.msra.mxu1 %vm1683_vm15, %v1326_v27  ;;  %1349 = vmatpush1.bf16.msk.msra.mxu0 %vm1683_vm15, %v1347_v60 }
 0x336   : > { %1351 = vmatprep.subr.msk.bf16.mxu1 %vm1345_vm0, %v1344_v57  ;;  %771 = vmatprep.mubr.f32.mxu1 %v1503_v8 }
 0x338   : > { %1251 = vmatmul.mubr.msk.f32.vlgmr.msra.gmra.mrb[8].mxu0 %vm468_vm12, %v1655_v19  ;;  %1245 = vmatmul.mubr.msk.f32.gmra.mrb[10].mxu1 %vm468_vm12, %v1664_v20 }
 0x339   : > { %1353 = vmatpush1.bf16.msk.msra.mxu1 %vm1683_vm15, %v1347_v60  ;;  %876 = vmatprep.mubr.f32.mxu1 %v1503_v8 }
 0x33c   : > { %1252 = vmatmul.mubr.msk.f32.vlgmr.msra.gmra.mrb[12].mxu1 %vm468_vm12, %v1664_v20 }
 0x387   : > { %v1745_v10 = vpop.f32.mrb[0].mxu1 }
 0x388   : > { %v1747_v11 = vpop.f32.mrb[1].mxu1  ;;  %v560_v42 = vmul.f32 %v1745_v10, %v1745_v10 }
 0x389   : > { %v552_v47 = vadd.f32 %v1747_v11, %v1745_v10  ;;  %v561_v61 = vmul.f32 %v1747_v11, %v1747_v11 }
 0x38b   : > { %553 = vadd.xlane.f32.xlu1 %v552_v47  ;;  %v564_v62 = vadd.f32 %v561_v61, %v560_v42  ;;  %v1755_v0 = vpop.f32.mrb[2].mxu1 }
 0x38c   : > { %v1757_v8 = vpop.f32.mrb[3].mxu1  ;;  %v562_v2 = vmul.f32 %v1755_v0, %v1755_v0 }
 0x38d   : > { %v555_v3 = vadd.f32 %v1757_v8, %v1755_v0  ;;  %v563_v4 = vmul.f32 %v1757_v8, %v1757_v8 }
 0x38f   : > { %565 = vadd.xlane.f32.xlu1 %v564_v62  ;;  %v567_v6 = vadd.f32 %v563_v4, %v562_v2 }
 0x393   : > { %556 = vadd.xlane.f32.xlu1 %v555_v3 }
 0x397   : > { %568 = vadd.xlane.f32.xlu1 %v567_v6 }
 0x3ff   : > { %v1765_v9 = vpop.f32.mrb[4].mxu1 }
 0x400   : > { %v1767_v12 = vpop.f32.mrb[5].mxu1  ;;  %v673_v59 = vmul.f32 %v1765_v9, %v1765_v9 }
 0x401   : > { %v665_v1 = vadd.f32 %v1767_v12, %v1765_v9  ;;  %v674_v13 = vmul.f32 %v1767_v12, %v1767_v12 }
 0x403   : > { %v1775_v58 = vpop.f32.mrb[6].mxu1  ;;  %666 = vadd.xlane.f32.xlu0 %v665_v1  ;;  %v677_v63 = vadd.f32 %v674_v13, %v673_v59 }
 0x404   : > { %v1777_v15 = vpop.f32.mrb[7].mxu1  ;;  %v675_v7 = vmul.f32 %v1775_v58, %v1775_v58 }
 0x405   : > { %678 = vadd.xlane.f32.xlu1 %v677_v63  ;;  %v668_v16 = vadd.f32 %v1777_v15, %v1775_v58  ;;  %v676_v5 = vmul.f32 %v1777_v15, %v1777_v15 }
 0x407   : > { %v1785_v14 = vpop.f32.mrb[8].mxu1  ;;  %v680_v17 = vadd.f32 %v676_v5, %v675_v7 }
 0x408   : > { %v1787_v18 = vpop.f32.mrb[9].mxu1  ;;  %v786_v19 = vmul.f32 %v1785_v14, %v1785_v14 }
 0x409   : > { %v787_v20 = vmul.f32 %v1787_v18, %v1787_v18  ;;  %v778_v21 = vadd.f32 %v1787_v18, %v1785_v14 }
 0x40b   : > { %v1795_v23 = vpop.f32.mrb[8].mxu0  ;;  %v790_v24 = vadd.f32 %v787_v20, %v786_v19  ;;  %v1797_v25 = vpop.f32.mrb[10].mxu1 }
 0x40c   : > { %v1799_v26 = vpop.f32.mrb[9].mxu0  ;;  %v1801_v28 = vpop.f32.mrb[11].mxu1  ;;  %v788_v29 = vmul.f32 %v1797_v25, %v1797_v25  ;;  %v891_v30 = vmul.f32 %v1795_v23, %v1795_v23 }
 0x40d   : > { %v892_v31 = vmul.f32 %v1799_v26, %v1799_v26  ;;  %791 = vadd.xlane.f32.xlu1 %v790_v24  ;;  %v883_v32 = vadd.f32 %v1799_v26, %v1795_v23  ;;  %v781_v33 = vadd.f32 %v1801_v28, %v1797_v25  ;;  %v789_v34 = vmul.f32 %v1801_v28, %v1801_v28 }
 0x40f   : > { %884 = vadd.xlane.f32.xlu0 %v883_v32  ;;  %v1815_v35 = vpop.f32.mrb[12].mxu1  ;;  %v793_v22 = vadd.f32 %v789_v34, %v788_v29  ;;  %v895_v36 = vadd.f32 %v892_v31, %v891_v30 }
 0x410   : > { %v1817_v37 = vpop.f32.mrb[13].mxu1  ;;  %v893_v27 = vmul.f32 %v1815_v35, %v1815_v35 }
 0x411   : > { %782 = vadd.xlane.f32.xlu1 %v781_v33  ;;  %v894_v38 = vmul.f32 %v1817_v37, %v1817_v37  ;;  %v886_v39 = vadd.f32 %v1817_v37, %v1815_v35 }
 0x413   : > { %669 = vadd.xlane.f32.xlu0 %v668_v16  ;;  %v898_v40 = vadd.f32 %v894_v38, %v893_v27 }
 0x415   : > { %794 = vadd.xlane.f32.xlu1 %v793_v22 }
 0x417   : > { %681 = vadd.xlane.f32.xlu0 %v680_v17 }
 0x418   : > { %v554_v41 = vpop.xlane.xlu1 %553 }
 0x419   : > { %899 = vadd.xlane.f32.xlu1 %v898_v40 }
 0x41b   : > { %779 = vadd.xlane.f32.xlu0 %v778_v21 }
 0x41c   : > { %v566_v43 = vpop.xlane.xlu1 %565 }
 0x41f   : > { %896 = vadd.xlane.f32.xlu0 %v895_v36 }
 0x420   : > { %v557_v44 = vpop.xlane.xlu1 %556 }
 0x423   : > { %887 = vadd.xlane.f32.xlu0 %v886_v39 }
 0x424   : > { %v569_v45 = vpop.xlane.xlu1 %568 }
 0x490   : > { %v667_v46 = vpop.xlane.xlu0 %666 }
 0x491   : > { %v671_v55 = vadd.f32 %v667_v46, %v554_v41 }
 0x492   : > { %v679_v48 = vpop.xlane.xlu1 %678 }
 0x493   : > { %v683_v60 = vadd.f32 %v679_v48, %v566_v43 }
 0x49a   : > { %v792_v49 = vpop.xlane.xlu1 %791 }
 0x49b   : > { %v796_v47 = vadd.f32 %v792_v49, %v683_v60 }
 0x49c   : > { %v885_v50 = vpop.xlane.xlu0 %884 }
 0x49e   : > { %v783_v52 = vpop.xlane.xlu1 %782 }
 0x4a0   : > { %v670_v51 = vpop.xlane.xlu0 %669 }
 0x4a1   : > { %v672_v61 = vadd.f32 %v670_v51, %v557_v44 }
 0x4a2   : > { %v795_v54 = vpop.xlane.xlu1 %794 }
 0x4a3   : > { %v785_v1 = vadd.f32 %v783_v52, %v672_v61 }
 0x4a4   : > { %v682_v53 = vpop.xlane.xlu0 %681 }
 0x4a5   : > { %v684_v56 = vadd.f32 %v682_v53, %v569_v45 }
 0x4a6   : > { %v900_v3 = vpop.xlane.xlu1 %899 }
 0x4a7   : > { %v797_v62 = vadd.f32 %v795_v54, %v684_v56 }
 0x4a8   : > { %v780_v57 = vpop.xlane.xlu0 %779 }
 0x4a9   : > { %v784_v42 = vadd.f32 %v780_v57, %v671_v55  ;;  %v902_v13 = vadd.f32 %v900_v3, %v797_v62 }
 0x4ab   : > { %v889_v2 = vadd.f32 %v885_v50, %v784_v42  ;;  %v918_v19 = vrot.slane %v902_v13, 4 }
 0x4ac   : > { %v897_v4 = vpop.xlane.xlu0 %896 }
 0x4ad   : > { %v904_v6 = vrot.slane %v889_v2, 4  ;;  %v901_v59 = vadd.f32 %v897_v4, %v796_v47 }
 0x4af   : > { %v913_v63 = vrot.slane %v901_v59, 4  ;;  %v906_v5 = vadd.f32 %v904_v6, %v889_v2 }
 0x4b0   : > { %v888_v7 = vpop.xlane.xlu0 %887 }
 0x4b1   : > { %v915_v16 = vadd.f32 %v913_v63, %v901_v59  ;;  %v890_v17 = vadd.f32 %v888_v7, %v785_v1 }
 0x4b3   : > { %v916_v20 = vadd.f32 %v915_v16, %v902_v13  ;;  %v907_v21 = vadd.f32 %v906_v5, %v890_v17  ;;  %v909_v24 = vrot.slane %v890_v17, 4 }
 0x4b5   : > { %v920_v29 = vadd.f32 %v918_v19, %v916_v20  ;;  %v911_v30 = vadd.f32 %v909_v24, %v907_v21 }
 0x4b7   : > { %v922_v31 = vmul.f32 0.00024414063, %v911_v30  ;;  %v923_v32 = vmul.f32 0.00024414063, %v920_v29 }
 0x4b9   : > { %v924_v33 = vmul.f32 %v922_v31, %v922_v31  ;;  %v933_v36 = vsub.f32 0.0, %v922_v31 }
 0x4bb   : > { %v925_v34 = vsub.f32 %v923_v32, %v924_v33 }
 0x4bd   : > { %v926_v22 = vadd.f32 1e-05, %v925_v34 }
 0x4bf   : > { %1427 = vrsqrt.f32 %v926_v22 }
 0x4c9   : > { %v1428_v27 = vpop.eup %1427 }
 0x4ca   : > { %v929_v38 = vrot.slane %v1428_v27, 4  ;;  %v934_v39 = vmul.f32 %v1428_v27, %v933_v36 }
 0x4cc   : > { %v932_v40 = vsel %vm931_vm1, %v1428_v27, %v929_v38  ;;  %v936_v41 = vrot.slane %v934_v39, 4 }
 0x4cd   : > { %941 = vperm.xlu0 %1399, %v932_v40  }
 0x4ce   : > { %v938_v43 = vsel %vm931_vm1, %v934_v39, %v936_v41 }
 0x4cf   : > { %950 = vperm.xlu1 %1398, %v938_v43  }
 0x54c   : > { %v1825_v44 = vpop.permute.xlu0 %941 }
 0x54d   : > { %v944_v45 = vmul.f32 %v1825_v44, %v1745_v10  ;;  %v945_v46 = vmul.f32 %v1825_v44, %v1747_v11  ;;  %v946_v48 = vmul.f32 %v1825_v44, %v1755_v0  ;;  %v947_v49 = vmul.f32 %v1825_v44, %v1757_v8 }
 0x54e   : > { %v981_v50 = vmul.f32 %v1825_v44, %v1765_v9  ;;  %v982_v51 = vmul.f32 %v1825_v44, %v1767_v12  ;;  %v1839_v52 = vpop.permute.xlu1 %950  ;;  %v983_v10 = vmul.f32 %v1825_v44, %v1775_v58  ;;  %v984_v11 = vmul.f32 %v1825_v44, %v1777_v15 }
 0x54f   : > { %v1013_v0 = vmul.f32 %v1825_v44, %v1785_v14  ;;  %v953_v53 = vadd.f32 %v1839_v52, %v944_v45  ;;  %v954_v8 = vadd.f32 %v1839_v52, %v945_v46  ;;  %v955_v9 = vadd.f32 %v1839_v52, %v946_v48 }
 0x550   : > { %v956_v54 = vadd.f32 %v1839_v52, %v947_v49  ;;  %v1014_v12 = vmul.f32 %v1825_v44, %v1787_v18  ;;  %v1015_v58 = vmul.f32 %v1825_v44, %v1797_v25  ;;  %v985_v55 = vadd.f32 %v981_v50, %v1839_v52 }
 0x551   : > { %v986_v15 = vadd.f32 %v982_v51, %v1839_v52  ;;  %v1253_v56 = vmul.f32 -1.442695, %v953_v53  ;;  %v1254_v14 = vmul.f32 -1.442695, %v954_v8  ;;  %v1255_v57 = vmul.f32 -1.442695, %v955_v9 }
 0x552   : > { %v987_v60 = vadd.f32 %v983_v10, %v1839_v52  ;;  %v1016_v42 = vmul.f32 %v1825_v44, %v1801_v28  ;;  %v1256_v47 = vmul.f32 -1.442695, %v956_v54  ;;  %v988_v61 = vadd.f32 %v984_v11, %v1839_v52 }
 0x553   : > { %v1045_v18 = vmul.f32 %v1825_v44, %v1795_v23  ;;  %1429 = vpow2.f32 %v1253_v56  ;;  %v1257_v25 = vmul.f32 -1.442695, %v985_v55  ;;  %v1017_v62 = vadd.f32 %v1013_v0, %v1839_v52 }
 0x554   : > { %1431 = vpow2.f32 %v1254_v14  ;;  %v1258_v2 = vmul.f32 -1.442695, %v986_v15  ;;  %v1018_v3 = vadd.f32 %v1014_v12, %v1839_v52  ;;  %v1259_v4 = vmul.f32 -1.442695, %v987_v60 }
 0x555   : > { %1433 = vpow2.f32 %v1255_v57  ;;  %v1019_v6 = vadd.f32 %v1015_v58, %v1839_v52  ;;  %v1260_v28 = vmul.f32 -1.442695, %v988_v61  ;;  %v1020_v59 = vadd.f32 %v1016_v42, %v1839_v52 }
 0x556   : > { %1435 = vpow2.f32 %v1256_v47  ;;  %v1261_v1 = vmul.f32 -1.442695, %v1017_v62  ;;  %v1049_v23 = vadd.f32 %v1045_v18, %v1839_v52  ;;  %v1262_v13 = vmul.f32 -1.442695, %v1018_v3 }
 0x557   : > { %1437 = vpow2.f32 %v1257_v25  ;;  %v1263_v63 = vmul.f32 -1.442695, %v1019_v6  ;;  %v1264_v7 = vmul.f32 -1.442695, %v1020_v59  ;;  %v1046_v29 = vmul.f32 %v1825_v44, %v1799_v26 }
 0x558   : > { %1439 = vpow2.f32 %v1258_v2  ;;  %v1265_v16 = vmul.f32 -1.442695, %v1049_v23  ;;  %v1047_v32 = vmul.f32 %v1825_v44, %v1815_v35  ;;  %v1048_v22 = vmul.f32 %v1825_v44, %v1817_v37 }
 0x559   : > { %1441 = vpow2.f32 %v1259_v4  ;;  %v1050_v40 = vadd.f32 %v1046_v29, %v1839_v52 }
 0x55a   : > { %1443 = vpow2.f32 %v1260_v28  ;;  %v1051_v35 = vadd.f32 %v1047_v32, %v1839_v52  ;;  %v1052_v37 = vadd.f32 %v1048_v22, %v1839_v52 }
 0x55b   : > { %1445 = vpow2.f32 %v1261_v1  ;;  %v1266_v51 = vmul.f32 -1.442695, %v1050_v40 }
 0x55c   : > { %1447 = vpow2.f32 %v1262_v13  ;;  %v1267_v0 = vmul.f32 -1.442695, %v1051_v35  ;;  %v1268_v8 = vmul.f32 -1.442695, %v1052_v37 }
 0x55d   : > { %v1430_v5 = vpop.eup %1429  ;;  %1449 = vpow2.f32 %v1263_v63 }
 0x55e   : > { %v1432_v17 = vpop.eup %1431  ;;  %v969_v19 = vadd.f32 1.0, %v1430_v5  ;;  %1451 = vpow2.f32 %v1264_v7 }
 0x55f   : > { %v1434_v20 = vpop.eup %1433  ;;  %v970_v21 = vadd.f32 1.0, %v1432_v17  ;;  %1453 = vpow2.f32 %v1265_v16 }
 0x560   : > { %v1436_v24 = vpop.eup %1435  ;;  %v971_v30 = vadd.f32 1.0, %v1434_v20  ;;  %1455 = vrcp.f32 %v969_v19 }
 0x561   : > { %v1438_v31 = vpop.eup %1437  ;;  %v972_v33 = vadd.f32 1.0, %v1436_v24  ;;  %1457 = vrcp.f32 %v970_v21 }
 0x562   : > { %v1440_v34 = vpop.eup %1439  ;;  %1459 = vrcp.f32 %v971_v30  ;;  %v1001_v36 = vadd.f32 1.0, %v1438_v31 }
 0x563   : > { %v1442_v27 = vpop.eup %1441  ;;  %1461 = vrcp.f32 %v972_v33  ;;  %v1002_v38 = vadd.f32 1.0, %v1440_v34 }
 0x564   : > { %v1444_v39 = vpop.eup %1443  ;;  %v1003_v26 = vadd.f32 1.0, %v1442_v27  ;;  %1463 = vrcp.f32 %v1001_v36 }
 0x565   : > { %v1446_v41 = vpop.eup %1445  ;;  %v1004_v43 = vadd.f32 1.0, %v1444_v39  ;;  %1465 = vrcp.f32 %v1002_v38 }
 0x566   : > { %v1448_v45 = vpop.eup %1447  ;;  %1467 = vrcp.f32 %v1003_v26  ;;  %v1033_v46 = vadd.f32 1.0, %v1446_v41 }
 0x567   : > { %v1450_v44 = vpop.eup %1449  ;;  %1469 = vrcp.f32 %v1004_v43  ;;  %v1034_v48 = vadd.f32 1.0, %v1448_v45 }
 0x568   : > { %v1452_v49 = vpop.eup %1451  ;;  %v1035_v50 = vadd.f32 1.0, %v1450_v44  ;;  %1471 = vrcp.f32 %v1033_v46 }
 0x569   : > { %v1454_v10 = vpop.eup %1453  ;;  %v1036_v11 = vadd.f32 1.0, %v1452_v49  ;;  %1473 = vrcp.f32 %v1034_v48 }
 0x56a   : > { %v1456_v53 = vpop.eup %1455  ;;  %1475 = vrcp.f32 %v1035_v50  ;;  %v1065_v2 = vadd.f32 1.0, %v1454_v10 }
 0x56b   : > { %v1458_v9 = vpop.eup %1457  ;;  %1477 = vrcp.f32 %v1036_v11 }
 0x56c   : > { %v1460_v52 = vpop.eup %1459  ;;  %1479 = vpow2.f32 %v1266_v51  ;;  %v1079_v54 = vcombine.low %v1456_v53, %v1458_v9  ;;  %v1082_v12 = vcombine.high %v1456_v53, %v1458_v9 }
 0x56d   : > { %v1462_v58 = vpop.eup %1461  ;;  %1481 = vpow2.f32 %v1267_v0 }
 0x56e   : > { %v1464_v55 = vpop.eup %1463  ;;  %1483 = vpow2.f32 %v1268_v8  ;;  %1081 = vst [vmem:[%s1881_s9] sm:$0xff] %v1079_v54  ;;  %1269 = vst [vmem:[%s1881_s9 + $0x8] sm:$0xff] %v1082_v12  ;;  %v1098_v15 = vcombine.low %v1460_v52, %v1462_v58  ;;  %v1102_v56 = vcombine.high %v1460_v52, %v1462_v58 }
 0x56f   : > { %v1466_v14 = vpop.eup %1465  ;;  %1485 = vrcp.f32 %v1065_v2 }
 0x570   : > { %v1468_v57 = vpop.eup %1467  ;;  %v1088_v60 = vcombine.low %v1464_v55, %v1466_v14  ;;  %v1092_v42 = vcombine.high %v1464_v55, %v1466_v14  ;;  %1272 = vst [vmem:[%s1881_s9 + $0x20] sm:$0xff] %v1098_v15  ;;  %1273 = vst [vmem:[%s1881_s9 + $0x28] sm:$0xff] %v1102_v56 }
 0x571   : > { %v1470_v47 = vpop.eup %1469 }
 0x572   : > { %v1472_v61 = vpop.eup %1471  ;;  %1270 = vst [vmem:[%s1881_s9 + $0x10] sm:$0xff] %v1088_v60  ;;  %1271 = vst [vmem:[%s1881_s9 + $0x18] sm:$0xff] %v1092_v42  ;;  %v1108_v18 = vcombine.low %v1468_v57, %v1470_v47  ;;  %v1112_v25 = vcombine.high %v1468_v57, %v1470_v47 }
 0x573   : > { %v1474_v62 = vpop.eup %1473 }
 0x574   : > { %v1476_v3 = vpop.eup %1475  ;;  %1274 = vst [vmem:[%s1881_s9 + $0x30] sm:$0xff] %v1108_v18  ;;  %1275 = vst [vmem:[%s1881_s9 + $0x38] sm:$0xff] %v1112_v25  ;;  %v1118_v4 = vcombine.low %v1472_v61, %v1474_v62  ;;  %v1122_v6 = vcombine.high %v1472_v61, %v1474_v62 }
 0x575   : > { %v1478_v28 = vpop.eup %1477 }
 0x576   : > { %v1480_v59 = vpop.eup %1479  ;;  %1276 = vst [vmem:[%s1881_s9 + $0x40] sm:$0xff] %v1118_v4  ;;  %1277 = vst [vmem:[%s1881_s9 + $0x48] sm:$0xff] %v1122_v6  ;;  %v1138_v1 = vcombine.low %v1476_v3, %v1478_v28  ;;  %v1142_v23 = vcombine.high %v1476_v3, %v1478_v28 }
 0x577   : > { %v1482_v13 = vpop.eup %1481  ;;  %v1066_v63 = vadd.f32 1.0, %v1480_v59 }
 0x578   : > { %v1484_v7 = vpop.eup %1483  ;;  %v1067_v16 = vadd.f32 1.0, %v1482_v13  ;;  %1280 = vst [vmem:[%s1881_s9 + $0x60] sm:$0xff] %v1138_v1  ;;  %1281 = vst [vmem:[%s1881_s9 + $0x68] sm:$0xff] %v1142_v23 }
 0x579   : > { %v1068_v5 = vadd.f32 1.0, %v1484_v7  ;;  %1487 = vrcp.f32 %v1066_v63  ;;  %v1486_v17 = vpop.eup %1485 }
 0x57a   : > { %1489 = vrcp.f32 %v1067_v16 }
 0x57b   : > { %1491 = vrcp.f32 %v1068_v5 }
 0x583   : > { %v1488_v19 = vpop.eup %1487 }
 0x584   : > { %v1490_v20 = vpop.eup %1489  ;;  %v1128_v21 = vcombine.low %v1486_v17, %v1488_v19  ;;  %v1132_v24 = vcombine.high %v1486_v17, %v1488_v19 }
 0x585   : > { %v1492_v29 = vpop.eup %1491 }
 0x586   : > { %1278 = vst [vmem:[%s1881_s9 + $0x50] sm:$0xff] %v1128_v21  ;;  %1279 = vst [vmem:[%s1881_s9 + $0x58] sm:$0xff] %v1132_v24  ;;  %v1148_v30 = vcombine.low %v1490_v20, %v1492_v29  ;;  %v1152_v31 = vcombine.high %v1490_v20, %v1492_v29 }
 0x588   : > { %1282 = vst [vmem:[%s1881_s9 + $0x70] sm:$0xff] %v1148_v30  ;;  %1283 = vst [vmem:[%s1881_s9 + $0x78] sm:$0xff] %v1152_v31 }
 0x589 PF: > { %s13_s12 = sadd.s32 1, %s1499_s12  }
 0x58a   : > { %p10_p4 = scmp.ge.s32.totalorder %s13_s12, 4  }
 0x58c   :  { %12 = sbr.rel (!%p10_p4) target bundleno = 1 (0x1), region = 77 }

</bundles_post_ra>
